<compile_context>
chip_gen: v7x
topology: tpu7x:2x2x1
jax: 0.10.0
libtpu: 0.0.40
codegen_flags: <defaults>
</compile_context>

<pallas_src>
import functools

import numpy as np
import jax
import jax.numpy as jnp
from jax.experimental import pallas as pl
from jax.experimental.pallas import tpu as pltpu


def _round_up(x, m):
    return -(-x // m) * m


def _upconv_se_kernel(x_ref, w_ref, b_ref, wse_ref, bse_ref, mask_ref, o_ref,
                      acc_ref, *, nb, n_phase, n_taps, starts, seg_len, inv_hw):
    # x_ref:    (Nb, Cin_p, Hp*Wp)              bf16  padded, flattened input
    # w_ref:    (n_phase, Cout, n_taps*Cin_p)   bf16  per-phase fused conv weights
    # b_ref:    (Cout, 1)                       f32   conv-transpose bias
    # wse_ref:  (Cout, Cout)                    bf16  SE 1x1-conv weight [out, in]
    # bse_ref:  (Cout, 1)                       f32   SE 1x1-conv bias
    # mask_ref: (1, Nb*seg_len)                 f32   1.0 on valid output lanes
    # o_ref:    (Nb, n_phase, Cout, seg_len)          gated per-phase conv output
    # acc_ref:  (n_phase, Cout, Nb*seg_len)     f32   VMEM scratch accumulator
    cout = b_ref.shape[0]
    bias = b_ref[...]
    mask = mask_ref[...]
    pools = [jnp.zeros((cout, 1), jnp.float32) for _ in range(nb)]

    for q in range(n_phase):                    # static loop over s*s phases
        # Fused im2col patch for this phase: (n_taps*Cin_p, Nb*seg_len).
        # Lane concat across images at multiples of seg_len (128-aligned) and
        # sublane concat across taps at multiples of Cin_p (bf16 tile-aligned),
        # so both concats are pure vreg placement (no relayout copies).
        tap_rows = []
        for t in range(n_taps):
            st = starts[q][t]
            imgs = [x_ref[n, :, st:st + seg_len] for n in range(nb)]
            tap_rows.append(imgs[0] if nb == 1
                            else jnp.concatenate(imgs, axis=1))
        patch = (tap_rows[0] if n_taps == 1
                 else jnp.concatenate(tap_rows, axis=0))        # bf16

        # One MXU matmul per phase over all Nb images, f32 accumulation.
        acc = jnp.dot(w_ref[q], patch,
                      preferred_element_type=jnp.float32) + bias  # (Cout, Nb*L)

        # SE pool: masked lane reduce per image.  The mask is required: invalid
        # lanes wrap into real neighboring input data, so their dot is nonzero.
        masked = acc * mask
        for n in range(nb):
            pools[n] = pools[n] + jnp.sum(
                masked[:, n * seg_len:(n + 1) * seg_len], axis=1, keepdims=True)
        acc_ref[q] = acc

    # SE gating: global average pool -> 1x1 conv (bf16 MXU) -> sigmoid (f32).
    pooled = (pools[0] if nb == 1
              else jnp.concatenate(pools, axis=1)) * inv_hw       # (Cout, Nb) f32
    z = jnp.dot(wse_ref[...], pooled.astype(jnp.bfloat16),
                preferred_element_type=jnp.float32) + bse_ref[...]
    gate = jax.nn.sigmoid(z)                                      # (Cout, Nb) f32

    # Rescale and store: per image, full-width lane-dense stores.
    for n in range(nb):
        g = gate[:, n:n + 1]                                      # (Cout, 1)
        o_ref[n] = (acc_ref[:, :, n * seg_len:(n + 1) * seg_len]
                    * g[None, :, :]).astype(o_ref.dtype)


def _phase_taps(size, k, s, p, out_size):
    """Per output-phase tap bookkeeping for the sub-pixel decomposition."""
    m_max = -(-k // s)                              # ceil(k / s) taps per phase
    per_phase, rels = [], []
    for q in range(s):
        r0 = (q + p) % s
        off = (q + p - r0) // s
        taps = []
        for m in range(m_max):
            kk = r0 + s * m
            taps.append((kk if kk < k else None, off - m))
            if kk < k:
                rels.append(off - m)
        per_phase.append(taps)
    pad_lo = max(0, -min(rels))
    q_size = out_size // s
    pad_hi = max(0, max(rels) + q_size - size)
    return per_phase, m_max, pad_lo, pad_hi, q_size


def _tap_offsets(taps, pad_lo, full, q_sz):
    """Row/col offsets into the padded input per (phase, tap).

    Dead taps (kernel index beyond K) get offset 0 -- their weight block is
    zero, so the offset is irrelevant.  Live taps must land inside the padded
    range: assert instead of silently clamping (correctness-review fix)."""
    offs = []
    for tq in taps:
        row = []
        for kk, rel in tq:
            if kk is None:
                row.append(0)
                continue
            d = rel + pad_lo
            assert 0 <= d <= full - q_sz, (
                f"tap offset {d} outside padded range [0, {full - q_sz}]")
            row.append(d)
        offs.append(row)
    return offs


@functools.partial(jax.jit, static_argnames=("stride", "padding"))
def up_conv2d_segating(x_nchw, w_t, b_t, w_se, b_se, *, stride, padding):
    """ConvTranspose2d(k, stride, padding) + SEGating.  NCHW in / NCHW out."""
    N, Cin, H, W = x_nchw.shape
    Cin2, Cout, K, K2 = w_t.shape
    assert Cin == Cin2 and K == K2
    s, p = int(stride), int(padding)
    Hout = (H - 1) * s - 2 * p + K
    Wout = (W - 1) * s - 2 * p + K
    assert Hout > 0 and Wout > 0
    # TODO(synk): only the uniform-phase case (output divisible by stride) is
    # implemented; covers the model's K=4 / stride=2 / padding=1 decoder blocks.
    assert Hout % s == 0 and Wout % s == 0

    taps_h, Mh, pad_t, pad_b, Hq = _phase_taps(H, K, s, p, Hout)
    taps_w, Mw, pad_l, pad_r, Wq = _phase_taps(W, K, s, p, Wout)
    n_taps, n_phase = Mh * Mw, s * s

    Hp, Wp = H + pad_t + pad_b, W + pad_l + pad_r
    L = Hq * Wp                        # per-phase slab length (valid lanes)
    L_pad = _round_up(L, 128)          # lane-dense slab length (full-width vst)

    dh = _tap_offsets(taps_h, pad_t, Hp, Hq)
    dw = _tap_offsets(taps_w, pad_l, Wp, Wq)
    # Flattened-input start offset per (phase, tap): full-width rows are kept so
    # every tap is one contiguous lane slice; extra columns are masked for pool.
    starts = tuple(
        tuple(dh[qh][mh] * Wp + dw[qw][mw]
              for mh in range(Mh) for mw in range(Mw))
        for qh in range(s) for qw in range(s))

    # Make sure the longest flat slice stays in bounds (spare zero bottom rows).
    max_start = max(max(row) for row in starts)
    need = max_start + L_pad - Hp * Wp
    if need > 0:
        extra = -(-need // Wp)
        pad_b += extra
        Hp += extra

    # Channel padding to the bf16 sublane tile so slabs / patch are tile-aligned.
    Cin_p = _round_up(Cin, 16)

    # Batch folding: several images per grid step (amortize per-step overhead).
    # TODO(synk): capacity-aware cap once spatial (Hout) tiling lands.
    nb = 1
    for d in range(min(N, 8), 0, -1):
        if N % d == 0:
            nb = d
            break
    G = N // nb

    # --- plain-JAX glue: pad + flatten input, build fused per-phase weights ---
    x_pad = jnp.pad(x_nchw, ((0, 0), (0, Cin_p - Cin),
                             (pad_t, pad_b), (pad_l, pad_r)))
    x_flat = x_pad.reshape(N, Cin_p, Hp * Wp).astype(jnp.bfloat16)

    rows = []
    for qh in range(s):
        for qw in range(s):
            blocks = []
            for mh in range(Mh):
                kh = taps_h[qh][mh][0]
                for mw in range(Mw):
                    kw = taps_w[qw][mw][0]
                    blk = jnp.zeros((Cout, Cin_p), jnp.float32)
                    if kh is not None and kw is not None:
                        blk = blk.at[:, :Cin].set(w_t[:, :, kh, kw].T)
                    blocks.append(blk)
            rows.append(jnp.concatenate(blocks, axis=1))       # (Cout, T*Cin_p)
    w_mat = jnp.stack(rows, axis=0).astype(jnp.bfloat16)       # (s*s, Cout, T*Cin_p)

    b_col = b_t.reshape(Cout, 1).astype(jnp.float32)
    wse = w_se.reshape(Cout, Cout).astype(jnp.bfloat16)        # bf16 gate matmul
    bse_col = b_se.reshape(Cout, 1).astype(jnp.float32)

    j = jnp.arange(L_pad, dtype=jnp.int32)
    valid = (j < L) & ((j % Wp) < Wq)
    mask = jnp.tile(valid.astype(jnp.float32).reshape(1, L_pad), (1, nb))

    kernel = functools.partial(
        _upconv_se_kernel, nb=nb, n_phase=n_phase, n_taps=n_taps,
        starts=starts, seg_len=L_pad, inv_hw=1.0 / float(Hout * Wout))

    out_itemsize = np.dtype(x_nchw.dtype).itemsize
    flops = (2 * N * n_phase * Cout * (n_taps * Cin_p) * L_pad   # conv matmuls
             + 4 * N * n_phase * Cout * L_pad                    # bias/mask/gate
             + 2 * N * Cout * Cout)                              # SE matmul
    bytes_accessed = (x_flat.size * 2 + w_mat.size * 2
                      + N * n_phase * Cout * L_pad * out_itemsize)

    out_wide = pl.pallas_call(
        kernel,
        out_shape=jax.ShapeDtypeStruct((N, n_phase, Cout, L_pad), x_nchw.dtype),
        grid=(G,),
        in_specs=[
            pl.BlockSpec((nb, Cin_p, Hp * Wp), lambda g: (g, 0, 0)),
            pl.BlockSpec((n_phase, Cout, n_taps * Cin_p), lambda g: (0, 0, 0)),
            pl.BlockSpec((Cout, 1), lambda g: (0, 0)),
            pl.BlockSpec((Cout, Cout), lambda g: (0, 0)),
            pl.BlockSpec((Cout, 1), lambda g: (0, 0)),
            pl.BlockSpec((1, nb * L_pad), lambda g: (0, 0)),
        ],
        out_specs=pl.BlockSpec((nb, n_phase, Cout, L_pad), lambda g: (g, 0, 0, 0)),
        scratch_shapes=[pltpu.VMEM((n_phase, Cout, nb * L_pad), jnp.float32)],
        compiler_params=pltpu.CompilerParams(
            dimension_semantics=("parallel",)),
        cost_estimate=pl.CostEstimate(flops=int(flops),
                                      transcendentals=int(N * Cout),
                                      bytes_accessed=int(bytes_accessed)),
    )(x_flat, w_mat, b_col, wse, bse_col, mask)

    # Sub-pixel (phase) interleave back to NCHW; drop pad lanes / spare columns.
    # TODO(synk): fuse this interleave into the kernel (see header) to avoid the
    # extra output-sized HBM round trip.
    out6 = out_wide[..., :L].reshape(N, s, s, Cout, Hq, Wp)[..., :Wq]
    out = jnp.transpose(out6, (0, 3, 4, 1, 5, 2)).reshape(N, Cout, Hout, Wout)
    return out


def _reference(x, w_t, b_t, w_se, b_se, stride, padding):
    """NumPy reference: exact PyTorch ConvTranspose2d + SEGating semantics."""
    x = np.asarray(x, np.float32)
    w_t = np.asarray(w_t, np.float32)
    b_t = np.asarray(b_t, np.float32)
    w_se = np.asarray(w_se, np.float32)
    b_se = np.asarray(b_se, np.float32)
    N, Cin, H, W = x.shape
    _, Cout, K, _ = w_t.shape
    s, p = stride, padding
    Hfull, Wfull = (H - 1) * s + K, (W - 1) * s + K
    full = np.zeros((N, Cout, Hfull, Wfull), np.float32)
    for kh in range(K):
        for kw in range(K):
            contrib = np.einsum('nchw,cd->ndhw', x, w_t[:, :, kh, kw])
            full[:, :, kh:kh + (H - 1) * s + 1:s,
                 kw:kw + (W - 1) * s + 1:s] += contrib
    Hout = (H - 1) * s - 2 * p + K
    Wout = (W - 1) * s - 2 * p + K
    conv = full[:, :, p:p + Hout, p:p + Wout] + b_t[None, :, None, None]
    pooled = conv.mean(axis=(2, 3))                          # (N, Cout)
    gate = 1.0 / (1.0 + np.exp(-(pooled @ w_se.T + b_se)))   # (N, Cout)
    return conv * gate[:, :, None, None]


if __name__ == "__main__":
    # upConv2D(in_ch=4, out_ch=8, kernel_size=4, stride=2, padding=1)
    # batch=2, spatial 16x16 -> output spatial 32x32
    N, Cin, H, W = 2, 4, 16, 16
    Cout, K, stride, padding = 8, 4, 2, 1

    key = jax.random.PRNGKey(0)
    k1, k2, k3, k4, k5 = jax.random.split(key, 5)
    x = jax.random.normal(k1, (N, Cin, H, W), jnp.float32)
    w_t = jax.random.normal(k2, (Cin, Cout, K, K), jnp.float32) * 0.1   # ConvT weight
    b_t = jax.random.normal(k3, (Cout,), jnp.float32) * 0.1             # ConvT bias
    w_se = jax.random.normal(k4, (Cout, Cout), jnp.float32) * 0.1       # SE 1x1 weight
    b_se = jax.random.normal(k5, (Cout,), jnp.float32) * 0.1            # SE 1x1 bias

    out = up_conv2d_segating(x, w_t, b_t, w_se, b_se,
                             stride=stride, padding=padding)
    out = jax.block_until_ready(out)

    ref = _reference(x, w_t, b_t, w_se, b_se, stride, padding)
    assert out.shape == (N, Cout, 2 * H, 2 * W)
    np.testing.assert_allclose(np.asarray(out), ref, rtol=2e-2, atol=2e-2)
    print("KERNEL_OK")
</pallas_src>

<mosaic_0001>
module attributes {stable_mosaic.version = 11 : i64} {
  func.func @_upconv_se_kernel(%arg0: i32, %arg1: memref<2x16x432xbf16, #tpu.memory_space<vmem>>, %arg2: memref<4x8x64xbf16, #tpu.memory_space<vmem>>, %arg3: memref<8x1xf32, #tpu.memory_space<vmem>>, %arg4: memref<8x8xbf16, #tpu.memory_space<vmem>>, %arg5: memref<8x1xf32, #tpu.memory_space<vmem>>, %arg6: memref<1x768xf32, #tpu.memory_space<vmem>>, %arg7: memref<2x4x8x384xf32, #tpu.memory_space<vmem>>, %arg8: memref<4x8x768xf32, #tpu.memory_space<vmem>>) attributes {dimension_semantics = [#tpu.dimension_semantics<parallel>], iteration_bounds = array<i64: 1>, scalar_prefetch = 0 : i64, scratch_operands = 1 : i64, tpu.core_type = #tpu.core_type<tc>, window_params = [{transform_indices = @transform_0, window_bounds = array<i64: 2, 16, 432>}, {pipeline_mode = #tpu.pipeline_mode<synchronous>, transform_indices = @transform_1, window_bounds = array<i64: 4, 8, 64>}, {pipeline_mode = #tpu.pipeline_mode<synchronous>, transform_indices = @transform_2, window_bounds = array<i64: 8, 1>}, {pipeline_mode = #tpu.pipeline_mode<synchronous>, transform_indices = @transform_3, window_bounds = array<i64: 8, 8>}, {pipeline_mode = #tpu.pipeline_mode<synchronous>, transform_indices = @transform_4, window_bounds = array<i64: 8, 1>}, {pipeline_mode = #tpu.pipeline_mode<synchronous>, transform_indices = @transform_5, window_bounds = array<i64: 1, 768>}, {transform_indices = @transform_6, window_bounds = array<i64: 2, 4, 8, 384>}]} {
    %c0 = arith.constant 0 : index
    %c0_0 = arith.constant 0 : index
    %0 = vector.load %arg3[%c0, %c0_0] : memref<8x1xf32, #tpu.memory_space<vmem>>, vector<8x1xf32>
    %c0_1 = arith.constant 0 : index
    %c0_2 = arith.constant 0 : index
    %1 = vector.load %arg6[%c0_1, %c0_2] : memref<1x768xf32, #tpu.memory_space<vmem>>, vector<1x768xf32>
    %cst = arith.constant 0.000000e+00 : f32
    %2 = vector.broadcast %cst : f32 to vector<8x1xf32>
    %cst_3 = arith.constant 0.000000e+00 : f32
    %3 = vector.broadcast %cst_3 : f32 to vector<8x1xf32>
    %c0_4 = arith.constant 0 : index
    %c0_5 = arith.constant 0 : index
    %c19 = arith.constant 19 : index
    %4 = vector.load %arg1[%c0_4, %c0_5, %c19] : memref<2x16x432xbf16, #tpu.memory_space<vmem>>, vector<1x16x384xbf16>
    %5 = vector.shape_cast %4 : vector<1x16x384xbf16> to vector<16x384xbf16>
    %c1 = arith.constant 1 : index
    %c0_6 = arith.constant 0 : index
    %c19_7 = arith.constant 19 : index
    %6 = vector.load %arg1[%c1, %c0_6, %c19_7] : memref<2x16x432xbf16, #tpu.memory_space<vmem>>, vector<1x16x384xbf16>
    %7 = vector.shape_cast %6 : vector<1x16x384xbf16> to vector<16x384xbf16>
    %8 = tpu.concatenate %5, %7 in 1 : vector<16x384xbf16>, vector<16x384xbf16> -> vector<16x768xbf16>
    %c0_8 = arith.constant 0 : index
    %c0_9 = arith.constant 0 : index
    %c18 = arith.constant 18 : index
    %9 = vector.load %arg1[%c0_8, %c0_9, %c18] : memref<2x16x432xbf16, #tpu.memory_space<vmem>>, vector<1x16x384xbf16>
    %10 = vector.shape_cast %9 : vector<1x16x384xbf16> to vector<16x384xbf16>
    %c1_10 = arith.constant 1 : index
    %c0_11 = arith.constant 0 : index
    %c18_12 = arith.constant 18 : index
    %11 = vector.load %arg1[%c1_10, %c0_11, %c18_12] : memref<2x16x432xbf16, #tpu.memory_space<vmem>>, vector<1x16x384xbf16>
    %12 = vector.shape_cast %11 : vector<1x16x384xbf16> to vector<16x384xbf16>
    %13 = tpu.concatenate %10, %12 in 1 : vector<16x384xbf16>, vector<16x384xbf16> -> vector<16x768xbf16>
    %c0_13 = arith.constant 0 : index
    %c0_14 = arith.constant 0 : index
    %c1_15 = arith.constant 1 : index
    %14 = vector.load %arg1[%c0_13, %c0_14, %c1_15] : memref<2x16x432xbf16, #tpu.memory_space<vmem>>, vector<1x16x384xbf16>
    %15 = vector.shape_cast %14 : vector<1x16x384xbf16> to vector<16x384xbf16>
    %c1_16 = arith.constant 1 : index
    %c0_17 = arith.constant 0 : index
    %c1_18 = arith.constant 1 : index
    %16 = vector.load %arg1[%c1_16, %c0_17, %c1_18] : memref<2x16x432xbf16, #tpu.memory_space<vmem>>, vector<1x16x384xbf16>
    %17 = vector.shape_cast %16 : vector<1x16x384xbf16> to vector<16x384xbf16>
    %18 = tpu.concatenate %15, %17 in 1 : vector<16x384xbf16>, vector<16x384xbf16> -> vector<16x768xbf16>
    %c0_19 = arith.constant 0 : index
    %c0_20 = arith.constant 0 : index
    %c0_21 = arith.constant 0 : index
    %19 = vector.load %arg1[%c0_19, %c0_20, %c0_21] : memref<2x16x432xbf16, #tpu.memory_space<vmem>>, vector<1x16x384xbf16>
    %20 = vector.shape_cast %19 : vector<1x16x384xbf16> to vector<16x384xbf16>
    %c1_22 = arith.constant 1 : index
    %c0_23 = arith.constant 0 : index
    %c0_24 = arith.constant 0 : index
    %21 = vector.load %arg1[%c1_22, %c0_23, %c0_24] : memref<2x16x432xbf16, #tpu.memory_space<vmem>>, vector<1x16x384xbf16>
    %22 = vector.shape_cast %21 : vector<1x16x384xbf16> to vector<16x384xbf16>
    %23 = tpu.concatenate %20, %22 in 1 : vector<16x384xbf16>, vector<16x384xbf16> -> vector<16x768xbf16>
    %24 = tpu.concatenate %8, %13, %18, %23 in 0 : vector<16x768xbf16>, vector<16x768xbf16>, vector<16x768xbf16>, vector<16x768xbf16> -> vector<64x768xbf16>
    %c0_25 = arith.constant 0 : index
    %c0_26 = arith.constant 0 : index
    %c0_27 = arith.constant 0 : index
    %25 = vector.load %arg2[%c0_25, %c0_26, %c0_27] : memref<4x8x64xbf16, #tpu.memory_space<vmem>>, vector<1x8x64xbf16>
    %26 = vector.shape_cast %25 : vector<1x8x64xbf16> to vector<8x64xbf16>
    %cst_28 = arith.constant dense<0.000000e+00> : vector<8x768xf32>
    %27 = tpu.matmul %26, %24, %cst_28 {dimension_numbers = #tpu.dot_dimension_numbers<[1], [0], [0], [1], [0, 0, 1, 1], [], []>} : vector<8x64xbf16>, vector<64x768xbf16>, vector<8x768xf32> -> vector<8x768xf32>
    %28 = vector.broadcast %0 : vector<8x1xf32> to vector<8x768xf32>
    %29 = arith.addf %27, %28 : vector<8x768xf32>
    %30 = vector.broadcast %1 : vector<1x768xf32> to vector<8x768xf32>
    %31 = arith.mulf %29, %30 : vector<8x768xf32>
    %32 = vector.extract_strided_slice %31 {offsets = [0, 0], sizes = [8, 384], strides = [1, 1]} : vector<8x768xf32> to vector<8x384xf32>
    %cst_29 = arith.constant dense<0.000000e+00> : vector<8xf32>
    %33 = vector.multi_reduction <add>, %32, %cst_29 [1] : vector<8x384xf32> to vector<8xf32>
    %34 = vector.shape_cast %33 : vector<8xf32> to vector<8x1xf32>
    %35 = arith.addf %2, %34 : vector<8x1xf32>
    %36 = vector.extract_strided_slice %31 {offsets = [0, 384], sizes = [8, 384], strides = [1, 1]} : vector<8x768xf32> to vector<8x384xf32>
    %cst_30 = arith.constant dense<0.000000e+00> : vector<8xf32>
    %37 = vector.multi_reduction <add>, %36, %cst_30 [1] : vector<8x384xf32> to vector<8xf32>
    %38 = vector.shape_cast %37 : vector<8xf32> to vector<8x1xf32>
    %39 = arith.addf %3, %38 : vector<8x1xf32>
    %c0_31 = arith.constant 0 : index
    %c0_32 = arith.constant 0 : index
    %c0_33 = arith.constant 0 : index
    %40 = vector.load %arg8[%c0_31, %c0_32, %c0_33] : memref<4x8x768xf32, #tpu.memory_space<vmem>>, vector<1x8x768xf32>
    %41 = vector.shape_cast %40 : vector<1x8x768xf32> to vector<8x768xf32>
    %42 = vector.shape_cast %29 : vector<8x768xf32> to vector<1x8x768xf32>
    tpu.vector_store %arg8[%c0_31, %c0_32, %c0_33], %42 {strides = array<i32>} : memref<4x8x768xf32, #tpu.memory_space<vmem>>, vector<1x8x768xf32>,
    %c0_34 = arith.constant 0 : index
    %c0_35 = arith.constant 0 : index
    %c20 = arith.constant 20 : index
    %43 = vector.load %arg1[%c0_34, %c0_35, %c20] : memref<2x16x432xbf16, #tpu.memory_space<vmem>>, vector<1x16x384xbf16>
    %44 = vector.shape_cast %43 : vector<1x16x384xbf16> to vector<16x384xbf16>
    %c1_36 = arith.constant 1 : index
    %c0_37 = arith.constant 0 : index
    %c20_38 = arith.constant 20 : index
    %45 = vector.load %arg1[%c1_36, %c0_37, %c20_38] : memref<2x16x432xbf16, #tpu.memory_space<vmem>>, vector<1x16x384xbf16>
    %46 = vector.shape_cast %45 : vector<1x16x384xbf16> to vector<16x384xbf16>
    %47 = tpu.concatenate %44, %46 in 1 : vector<16x384xbf16>, vector<16x384xbf16> -> vector<16x768xbf16>
    %c0_39 = arith.constant 0 : index
    %c0_40 = arith.constant 0 : index
    %c19_41 = arith.constant 19 : index
    %48 = vector.load %arg1[%c0_39, %c0_40, %c19_41] : memref<2x16x432xbf16, #tpu.memory_space<vmem>>, vector<1x16x384xbf16>
    %49 = vector.shape_cast %48 : vector<1x16x384xbf16> to vector<16x384xbf16>
    %c1_42 = arith.constant 1 : index
    %c0_43 = arith.constant 0 : index
    %c19_44 = arith.constant 19 : index
    %50 = vector.load %arg1[%c1_42, %c0_43, %c19_44] : memref<2x16x432xbf16, #tpu.memory_space<vmem>>, vector<1x16x384xbf16>
    %51 = vector.shape_cast %50 : vector<1x16x384xbf16> to vector<16x384xbf16>
    %52 = tpu.concatenate %49, %51 in 1 : vector<16x384xbf16>, vector<16x384xbf16> -> vector<16x768xbf16>
    %c0_45 = arith.constant 0 : index
    %c0_46 = arith.constant 0 : index
    %c2 = arith.constant 2 : index
    %53 = vector.load %arg1[%c0_45, %c0_46, %c2] : memref<2x16x432xbf16, #tpu.memory_space<vmem>>, vector<1x16x384xbf16>
    %54 = vector.shape_cast %53 : vector<1x16x384xbf16> to vector<16x384xbf16>
    %c1_47 = arith.constant 1 : index
    %c0_48 = arith.constant 0 : index
    %c2_49 = arith.constant 2 : index
    %55 = vector.load %arg1[%c1_47, %c0_48, %c2_49] : memref<2x16x432xbf16, #tpu.memory_space<vmem>>, vector<1x16x384xbf16>
    %56 = vector.shape_cast %55 : vector<1x16x384xbf16> to vector<16x384xbf16>
    %57 = tpu.concatenate %54, %56 in 1 : vector<16x384xbf16>, vector<16x384xbf16> -> vector<16x768xbf16>
    %c0_50 = arith.constant 0 : index
    %c0_51 = arith.constant 0 : index
    %c1_52 = arith.constant 1 : index
    %58 = vector.load %arg1[%c0_50, %c0_51, %c1_52] : memref<2x16x432xbf16, #tpu.memory_space<vmem>>, vector<1x16x384xbf16>
    %59 = vector.shape_cast %58 : vector<1x16x384xbf16> to vector<16x384xbf16>
    %c1_53 = arith.constant 1 : index
    %c0_54 = arith.constant 0 : index
    %c1_55 = arith.constant 1 : index
    %60 = vector.load %arg1[%c1_53, %c0_54, %c1_55] : memref<2x16x432xbf16, #tpu.memory_space<vmem>>, vector<1x16x384xbf16>
    %61 = vector.shape_cast %60 : vector<1x16x384xbf16> to vector<16x384xbf16>
    %62 = tpu.concatenate %59, %61 in 1 : vector<16x384xbf16>, vector<16x384xbf16> -> vector<16x768xbf16>
    %63 = tpu.concatenate %47, %52, %57, %62 in 0 : vector<16x768xbf16>, vector<16x768xbf16>, vector<16x768xbf16>, vector<16x768xbf16> -> vector<64x768xbf16>
    %c1_56 = arith.constant 1 : index
    %c0_57 = arith.constant 0 : index
    %c0_58 = arith.constant 0 : index
    %64 = vector.load %arg2[%c1_56, %c0_57, %c0_58] : memref<4x8x64xbf16, #tpu.memory_space<vmem>>, vector<1x8x64xbf16>
    %65 = vector.shape_cast %64 : vector<1x8x64xbf16> to vector<8x64xbf16>
    %cst_59 = arith.constant dense<0.000000e+00> : vector<8x768xf32>
    %66 = tpu.matmul %65, %63, %cst_59 {dimension_numbers = #tpu.dot_dimension_numbers<[1], [0], [0], [1], [0, 0, 1, 1], [], []>} : vector<8x64xbf16>, vector<64x768xbf16>, vector<8x768xf32> -> vector<8x768xf32>
    %67 = vector.broadcast %0 : vector<8x1xf32> to vector<8x768xf32>
    %68 = arith.addf %66, %67 : vector<8x768xf32>
    %69 = vector.broadcast %1 : vector<1x768xf32> to vector<8x768xf32>
    %70 = arith.mulf %68, %69 : vector<8x768xf32>
    %71 = vector.extract_strided_slice %70 {offsets = [0, 0], sizes = [8, 384], strides = [1, 1]} : vector<8x768xf32> to vector<8x384xf32>
    %cst_60 = arith.constant dense<0.000000e+00> : vector<8xf32>
    %72 = vector.multi_reduction <add>, %71, %cst_60 [1] : vector<8x384xf32> to vector<8xf32>
    %73 = vector.shape_cast %72 : vector<8xf32> to vector<8x1xf32>
    %74 = arith.addf %35, %73 : vector<8x1xf32>
    %75 = vector.extract_strided_slice %70 {offsets = [0, 384], sizes = [8, 384], strides = [1, 1]} : vector<8x768xf32> to vector<8x384xf32>
    %cst_61 = arith.constant dense<0.000000e+00> : vector<8xf32>
    %76 = vector.multi_reduction <add>, %75, %cst_61 [1] : vector<8x384xf32> to vector<8xf32>
    %77 = vector.shape_cast %76 : vector<8xf32> to vector<8x1xf32>
    %78 = arith.addf %39, %77 : vector<8x1xf32>
    %c1_62 = arith.constant 1 : index
    %c0_63 = arith.constant 0 : index
    %c0_64 = arith.constant 0 : index
    %79 = vector.load %arg8[%c1_62, %c0_63, %c0_64] : memref<4x8x768xf32, #tpu.memory_space<vmem>>, vector<1x8x768xf32>
    %80 = vector.shape_cast %79 : vector<1x8x768xf32> to vector<8x768xf32>
    %81 = vector.shape_cast %68 : vector<8x768xf32> to vector<1x8x768xf32>
    tpu.vector_store %arg8[%c1_62, %c0_63, %c0_64], %81 {strides = array<i32>} : memref<4x8x768xf32, #tpu.memory_space<vmem>>, vector<1x8x768xf32>,
    %c0_65 = arith.constant 0 : index
    %c0_66 = arith.constant 0 : index
    %c37 = arith.constant 37 : index
    %82 = vector.load %arg1[%c0_65, %c0_66, %c37] : memref<2x16x432xbf16, #tpu.memory_space<vmem>>, vector<1x16x384xbf16>
    %83 = vector.shape_cast %82 : vector<1x16x384xbf16> to vector<16x384xbf16>
    %c1_67 = arith.constant 1 : index
    %c0_68 = arith.constant 0 : index
    %c37_69 = arith.constant 37 : index
    %84 = vector.load %arg1[%c1_67, %c0_68, %c37_69] : memref<2x16x432xbf16, #tpu.memory_space<vmem>>, vector<1x16x384xbf16>
    %85 = vector.shape_cast %84 : vector<1x16x384xbf16> to vector<16x384xbf16>
    %86 = tpu.concatenate %83, %85 in 1 : vector<16x384xbf16>, vector<16x384xbf16> -> vector<16x768xbf16>
    %c0_70 = arith.constant 0 : index
    %c0_71 = arith.constant 0 : index
    %c36 = arith.constant 36 : index
    %87 = vector.load %arg1[%c0_70, %c0_71, %c36] : memref<2x16x432xbf16, #tpu.memory_space<vmem>>, vector<1x16x384xbf16>
    %88 = vector.shape_cast %87 : vector<1x16x384xbf16> to vector<16x384xbf16>
    %c1_72 = arith.constant 1 : index
    %c0_73 = arith.constant 0 : index
    %c36_74 = arith.constant 36 : index
    %89 = vector.load %arg1[%c1_72, %c0_73, %c36_74] : memref<2x16x432xbf16, #tpu.memory_space<vmem>>, vector<1x16x384xbf16>
    %90 = vector.shape_cast %89 : vector<1x16x384xbf16> to vector<16x384xbf16>
    %91 = tpu.concatenate %88, %90 in 1 : vector<16x384xbf16>, vector<16x384xbf16> -> vector<16x768xbf16>
    %c0_75 = arith.constant 0 : index
    %c0_76 = arith.constant 0 : index
    %c19_77 = arith.constant 19 : index
    %92 = vector.load %arg1[%c0_75, %c0_76, %c19_77] : memref<2x16x432xbf16, #tpu.memory_space<vmem>>, vector<1x16x384xbf16>
    %93 = vector.shape_cast %92 : vector<1x16x384xbf16> to vector<16x384xbf16>
    %c1_78 = arith.constant 1 : index
    %c0_79 = arith.constant 0 : index
    %c19_80 = arith.constant 19 : index
    %94 = vector.load %arg1[%c1_78, %c0_79, %c19_80] : memref<2x16x432xbf16, #tpu.memory_space<vmem>>, vector<1x16x384xbf16>
    %95 = vector.shape_cast %94 : vector<1x16x384xbf16> to vector<16x384xbf16>
    %96 = tpu.concatenate %93, %95 in 1 : vector<16x384xbf16>, vector<16x384xbf16> -> vector<16x768xbf16>
    %c0_81 = arith.constant 0 : index
    %c0_82 = arith.constant 0 : index
    %c18_83 = arith.constant 18 : index
    %97 = vector.load %arg1[%c0_81, %c0_82, %c18_83] : memref<2x16x432xbf16, #tpu.memory_space<vmem>>, vector<1x16x384xbf16>
    %98 = vector.shape_cast %97 : vector<1x16x384xbf16> to vector<16x384xbf16>
    %c1_84 = arith.constant 1 : index
    %c0_85 = arith.constant 0 : index
    %c18_86 = arith.constant 18 : index
    %99 = vector.load %arg1[%c1_84, %c0_85, %c18_86] : memref<2x16x432xbf16, #tpu.memory_space<vmem>>, vector<1x16x384xbf16>
    %100 = vector.shape_cast %99 : vector<1x16x384xbf16> to vector<16x384xbf16>
    %101 = tpu.concatenate %98, %100 in 1 : vector<16x384xbf16>, vector<16x384xbf16> -> vector<16x768xbf16>
    %102 = tpu.concatenate %86, %91, %96, %101 in 0 : vector<16x768xbf16>, vector<16x768xbf16>, vector<16x768xbf16>, vector<16x768xbf16> -> vector<64x768xbf16>
    %c2_87 = arith.constant 2 : index
    %c0_88 = arith.constant 0 : index
    %c0_89 = arith.constant 0 : index
    %103 = vector.load %arg2[%c2_87, %c0_88, %c0_89] : memref<4x8x64xbf16, #tpu.memory_space<vmem>>, vector<1x8x64xbf16>
    %104 = vector.shape_cast %103 : vector<1x8x64xbf16> to vector<8x64xbf16>
    %cst_90 = arith.constant dense<0.000000e+00> : vector<8x768xf32>
    %105 = tpu.matmul %104, %102, %cst_90 {dimension_numbers = #tpu.dot_dimension_numbers<[1], [0], [0], [1], [0, 0, 1, 1], [], []>} : vector<8x64xbf16>, vector<64x768xbf16>, vector<8x768xf32> -> vector<8x768xf32>
    %106 = vector.broadcast %0 : vector<8x1xf32> to vector<8x768xf32>
    %107 = arith.addf %105, %106 : vector<8x768xf32>
    %108 = vector.broadcast %1 : vector<1x768xf32> to vector<8x768xf32>
    %109 = arith.mulf %107, %108 : vector<8x768xf32>
    %110 = vector.extract_strided_slice %109 {offsets = [0, 0], sizes = [8, 384], strides = [1, 1]} : vector<8x768xf32> to vector<8x384xf32>
    %cst_91 = arith.constant dense<0.000000e+00> : vector<8xf32>
    %111 = vector.multi_reduction <add>, %110, %cst_91 [1] : vector<8x384xf32> to vector<8xf32>
    %112 = vector.shape_cast %111 : vector<8xf32> to vector<8x1xf32>
    %113 = arith.addf %74, %112 : vector<8x1xf32>
    %114 = vector.extract_strided_slice %109 {offsets = [0, 384], sizes = [8, 384], strides = [1, 1]} : vector<8x768xf32> to vector<8x384xf32>
    %cst_92 = arith.constant dense<0.000000e+00> : vector<8xf32>
    %115 = vector.multi_reduction <add>, %114, %cst_92 [1] : vector<8x384xf32> to vector<8xf32>
    %116 = vector.shape_cast %115 : vector<8xf32> to vector<8x1xf32>
    %117 = arith.addf %78, %116 : vector<8x1xf32>
    %c2_93 = arith.constant 2 : index
    %c0_94 = arith.constant 0 : index
    %c0_95 = arith.constant 0 : index
    %118 = vector.load %arg8[%c2_93, %c0_94, %c0_95] : memref<4x8x768xf32, #tpu.memory_space<vmem>>, vector<1x8x768xf32>
    %119 = vector.shape_cast %118 : vector<1x8x768xf32> to vector<8x768xf32>
    %120 = vector.shape_cast %107 : vector<8x768xf32> to vector<1x8x768xf32>
    tpu.vector_store %arg8[%c2_93, %c0_94, %c0_95], %120 {strides = array<i32>} : memref<4x8x768xf32, #tpu.memory_space<vmem>>, vector<1x8x768xf32>,
    %c0_96 = arith.constant 0 : index
    %c0_97 = arith.constant 0 : index
    %c38 = arith.constant 38 : index
    %121 = vector.load %arg1[%c0_96, %c0_97, %c38] : memref<2x16x432xbf16, #tpu.memory_space<vmem>>, vector<1x16x384xbf16>
    %122 = vector.shape_cast %121 : vector<1x16x384xbf16> to vector<16x384xbf16>
    %c1_98 = arith.constant 1 : index
    %c0_99 = arith.constant 0 : index
    %c38_100 = arith.constant 38 : index
    %123 = vector.load %arg1[%c1_98, %c0_99, %c38_100] : memref<2x16x432xbf16, #tpu.memory_space<vmem>>, vector<1x16x384xbf16>
    %124 = vector.shape_cast %123 : vector<1x16x384xbf16> to vector<16x384xbf16>
    %125 = tpu.concatenate %122, %124 in 1 : vector<16x384xbf16>, vector<16x384xbf16> -> vector<16x768xbf16>
    %c0_101 = arith.constant 0 : index
    %c0_102 = arith.constant 0 : index
    %c37_103 = arith.constant 37 : index
    %126 = vector.load %arg1[%c0_101, %c0_102, %c37_103] : memref<2x16x432xbf16, #tpu.memory_space<vmem>>, vector<1x16x384xbf16>
    %127 = vector.shape_cast %126 : vector<1x16x384xbf16> to vector<16x384xbf16>
    %c1_104 = arith.constant 1 : index
    %c0_105 = arith.constant 0 : index
    %c37_106 = arith.constant 37 : index
    %128 = vector.load %arg1[%c1_104, %c0_105, %c37_106] : memref<2x16x432xbf16, #tpu.memory_space<vmem>>, vector<1x16x384xbf16>
    %129 = vector.shape_cast %128 : vector<1x16x384xbf16> to vector<16x384xbf16>
    %130 = tpu.concatenate %127, %129 in 1 : vector<16x384xbf16>, vector<16x384xbf16> -> vector<16x768xbf16>
    %c0_107 = arith.constant 0 : index
    %c0_108 = arith.constant 0 : index
    %c20_109 = arith.constant 20 : index
    %131 = vector.load %arg1[%c0_107, %c0_108, %c20_109] : memref<2x16x432xbf16, #tpu.memory_space<vmem>>, vector<1x16x384xbf16>
    %132 = vector.shape_cast %131 : vector<1x16x384xbf16> to vector<16x384xbf16>
    %c1_110 = arith.constant 1 : index
    %c0_111 = arith.constant 0 : index
    %c20_112 = arith.constant 20 : index
    %133 = vector.load %arg1[%c1_110, %c0_111, %c20_112] : memref<2x16x432xbf16, #tpu.memory_space<vmem>>, vector<1x16x384xbf16>
    %134 = vector.shape_cast %133 : vector<1x16x384xbf16> to vector<16x384xbf16>
    %135 = tpu.concatenate %132, %134 in 1 : vector<16x384xbf16>, vector<16x384xbf16> -> vector<16x768xbf16>
    %c0_113 = arith.constant 0 : index
    %c0_114 = arith.constant 0 : index
    %c19_115 = arith.constant 19 : index
    %136 = vector.load %arg1[%c0_113, %c0_114, %c19_115] : memref<2x16x432xbf16, #tpu.memory_space<vmem>>, vector<1x16x384xbf16>
    %137 = vector.shape_cast %136 : vector<1x16x384xbf16> to vector<16x384xbf16>
    %c1_116 = arith.constant 1 : index
    %c0_117 = arith.constant 0 : index
    %c19_118 = arith.constant 19 : index
    %138 = vector.load %arg1[%c1_116, %c0_117, %c19_118] : memref<2x16x432xbf16, #tpu.memory_space<vmem>>, vector<1x16x384xbf16>
    %139 = vector.shape_cast %138 : vector<1x16x384xbf16> to vector<16x384xbf16>
    %140 = tpu.concatenate %137, %139 in 1 : vector<16x384xbf16>, vector<16x384xbf16> -> vector<16x768xbf16>
    %141 = tpu.concatenate %125, %130, %135, %140 in 0 : vector<16x768xbf16>, vector<16x768xbf16>, vector<16x768xbf16>, vector<16x768xbf16> -> vector<64x768xbf16>
    %c3 = arith.constant 3 : index
    %c0_119 = arith.constant 0 : index
    %c0_120 = arith.constant 0 : index
    %142 = vector.load %arg2[%c3, %c0_119, %c0_120] : memref<4x8x64xbf16, #tpu.memory_space<vmem>>, vector<1x8x64xbf16>
    %143 = vector.shape_cast %142 : vector<1x8x64xbf16> to vector<8x64xbf16>
    %cst_121 = arith.constant dense<0.000000e+00> : vector<8x768xf32>
    %144 = tpu.matmul %143, %141, %cst_121 {dimension_numbers = #tpu.dot_dimension_numbers<[1], [0], [0], [1], [0, 0, 1, 1], [], []>} : vector<8x64xbf16>, vector<64x768xbf16>, vector<8x768xf32> -> vector<8x768xf32>
    %145 = vector.broadcast %0 : vector<8x1xf32> to vector<8x768xf32>
    %146 = arith.addf %144, %145 : vector<8x768xf32>
    %147 = vector.broadcast %1 : vector<1x768xf32> to vector<8x768xf32>
    %148 = arith.mulf %146, %147 : vector<8x768xf32>
    %149 = vector.extract_strided_slice %148 {offsets = [0, 0], sizes = [8, 384], strides = [1, 1]} : vector<8x768xf32> to vector<8x384xf32>
    %cst_122 = arith.constant dense<0.000000e+00> : vector<8xf32>
    %150 = vector.multi_reduction <add>, %149, %cst_122 [1] : vector<8x384xf32> to vector<8xf32>
    %151 = vector.shape_cast %150 : vector<8xf32> to vector<8x1xf32>
    %152 = arith.addf %113, %151 : vector<8x1xf32>
    %153 = vector.extract_strided_slice %148 {offsets = [0, 384], sizes = [8, 384], strides = [1, 1]} : vector<8x768xf32> to vector<8x384xf32>
    %cst_123 = arith.constant dense<0.000000e+00> : vector<8xf32>
    %154 = vector.multi_reduction <add>, %153, %cst_123 [1] : vector<8x384xf32> to vector<8xf32>
    %155 = vector.shape_cast %154 : vector<8xf32> to vector<8x1xf32>
    %156 = arith.addf %117, %155 : vector<8x1xf32>
    %c3_124 = arith.constant 3 : index
    %c0_125 = arith.constant 0 : index
    %c0_126 = arith.constant 0 : index
    %157 = vector.load %arg8[%c3_124, %c0_125, %c0_126] : memref<4x8x768xf32, #tpu.memory_space<vmem>>, vector<1x8x768xf32>
    %158 = vector.shape_cast %157 : vector<1x8x768xf32> to vector<8x768xf32>
    %159 = vector.shape_cast %146 : vector<8x768xf32> to vector<1x8x768xf32>
    tpu.vector_store %arg8[%c3_124, %c0_125, %c0_126], %159 {strides = array<i32>} : memref<4x8x768xf32, #tpu.memory_space<vmem>>, vector<1x8x768xf32>,
    %160 = tpu.concatenate %152, %156 in 1 : vector<8x1xf32>, vector<8x1xf32> -> vector<8x2xf32>
    %cst_127 = arith.constant 9.765625E-4 : f32
    %161 = vector.broadcast %cst_127 : f32 to vector<8x2xf32>
    %162 = arith.mulf %160, %161 : vector<8x2xf32>
    %c0_128 = arith.constant 0 : index
    %c0_129 = arith.constant 0 : index
    %163 = vector.load %arg4[%c0_128, %c0_129] : memref<8x8xbf16, #tpu.memory_space<vmem>>, vector<8x8xbf16>
    %164 = arith.truncf %162 : vector<8x2xf32> to vector<8x2xbf16>
    %cst_130 = arith.constant dense<0.000000e+00> : vector<8x2xf32>
    %165 = tpu.matmul %163, %164, %cst_130 {dimension_numbers = #tpu.dot_dimension_numbers<[1], [0], [0], [1], [0, 0, 1, 1], [], []>} : vector<8x8xbf16>, vector<8x2xbf16>, vector<8x2xf32> -> vector<8x2xf32>
    %c0_131 = arith.constant 0 : index
    %c0_132 = arith.constant 0 : index
    %166 = vector.load %arg5[%c0_131, %c0_132] : memref<8x1xf32, #tpu.memory_space<vmem>>, vector<8x1xf32>
    %167 = vector.broadcast %166 : vector<8x1xf32> to vector<8x2xf32>
    %168 = arith.addf %165, %167 : vector<8x2xf32>
    %169 = arith.negf %168 : vector<8x2xf32>
    %170 = math.exp %169 : vector<8x2xf32>
    %cst_133 = arith.constant 1.000000e+00 : f32
    %171 = vector.broadcast %cst_133 : f32 to vector<8x2xf32>
    %172 = arith.addf %171, %170 : vector<8x2xf32>
    %173 = arith.divf %171, %172 : vector<8x2xf32>
    %174 = vector.extract_strided_slice %173 {offsets = [0, 0], sizes = [8, 1], strides = [1, 1]} : vector<8x2xf32> to vector<8x1xf32>
    %c0_134 = arith.constant 0 : index
    %c0_135 = arith.constant 0 : index
    %c0_136 = arith.constant 0 : index
    %175 = vector.load %arg8[%c0_134, %c0_135, %c0_136] : memref<4x8x768xf32, #tpu.memory_space<vmem>>, vector<4x8x384xf32>
    %176 = vector.shape_cast %174 : vector<8x1xf32> to vector<1x8x1xf32>
    %177 = vector.broadcast %176 : vector<1x8x1xf32> to vector<4x8x384xf32>
    %178 = arith.mulf %175, %177 : vector<4x8x384xf32>
    %c0_137 = arith.constant 0 : index
    %c0_138 = arith.constant 0 : index
    %c0_139 = arith.constant 0 : index
    %c0_140 = arith.constant 0 : index
    %179 = vector.load %arg7[%c0_137, %c0_138, %c0_139, %c0_140] : memref<2x4x8x384xf32, #tpu.memory_space<vmem>>, vector<1x4x8x384xf32>
    %180 = vector.shape_cast %179 : vector<1x4x8x384xf32> to vector<4x8x384xf32>
    %181 = vector.shape_cast %178 : vector<4x8x384xf32> to vector<1x4x8x384xf32>
    tpu.vector_store %arg7[%c0_137, %c0_138, %c0_139, %c0_140], %181 {strides = array<i32>} : memref<2x4x8x384xf32, #tpu.memory_space<vmem>>, vector<1x4x8x384xf32>,
    %182 = vector.extract_strided_slice %173 {offsets = [0, 1], sizes = [8, 1], strides = [1, 1]} : vector<8x2xf32> to vector<8x1xf32>
    %c0_141 = arith.constant 0 : index
    %c0_142 = arith.constant 0 : index
    %c384 = arith.constant 384 : index
    %183 = vector.load %arg8[%c0_141, %c0_142, %c384] : memref<4x8x768xf32, #tpu.memory_space<vmem>>, vector<4x8x384xf32>
    %184 = vector.shape_cast %182 : vector<8x1xf32> to vector<1x8x1xf32>
    %185 = vector.broadcast %184 : vector<1x8x1xf32> to vector<4x8x384xf32>
    %186 = arith.mulf %183, %185 : vector<4x8x384xf32>
    %c1_143 = arith.constant 1 : index
    %c0_144 = arith.constant 0 : index
    %c0_145 = arith.constant 0 : index
    %c0_146 = arith.constant 0 : index
    %187 = vector.load %arg7[%c1_143, %c0_144, %c0_145, %c0_146] : memref<2x4x8x384xf32, #tpu.memory_space<vmem>>, vector<1x4x8x384xf32>
    %188 = vector.shape_cast %187 : vector<1x4x8x384xf32> to vector<4x8x384xf32>
    %189 = vector.shape_cast %186 : vector<4x8x384xf32> to vector<1x4x8x384xf32>
    tpu.vector_store %arg7[%c1_143, %c0_144, %c0_145, %c0_146], %189 {strides = array<i32>} : memref<2x4x8x384xf32, #tpu.memory_space<vmem>>, vector<1x4x8x384xf32>,
    return
  }
  func.func @transform_0(%arg0: i32) -> (i32, i32, i32) {
    %c0_i32 = arith.constant 0 : i32
    %c0_i32_0 = arith.constant 0 : i32
    %c0_i32_1 = arith.constant 0 : i32
    return %arg0, %c0_i32, %c0_i32_0 : i32, i32, i32
  }
  func.func @transform_1(%arg0: i32) -> (i32, i32, i32) {
    %c0_i32 = arith.constant 0 : i32
    %c0_i32_0 = arith.constant 0 : i32
    %c0_i32_1 = arith.constant 0 : i32
    %c0_i32_2 = arith.constant 0 : i32
    return %c0_i32, %c0_i32_0, %c0_i32_1 : i32, i32, i32
  }
  func.func @transform_2(%arg0: i32) -> (i32, i32) {
    %c0_i32 = arith.constant 0 : i32
    %c0_i32_0 = arith.constant 0 : i32
    %c0_i32_1 = arith.constant 0 : i32
    return %c0_i32, %c0_i32_0 : i32, i32
  }
  func.func @transform_3(%arg0: i32) -> (i32, i32) {
    %c0_i32 = arith.constant 0 : i32
    %c0_i32_0 = arith.constant 0 : i32
    %c0_i32_1 = arith.constant 0 : i32
    return %c0_i32, %c0_i32_0 : i32, i32
  }
  func.func @transform_4(%arg0: i32) -> (i32, i32) {
    %c0_i32 = arith.constant 0 : i32
    %c0_i32_0 = arith.constant 0 : i32
    %c0_i32_1 = arith.constant 0 : i32
    return %c0_i32, %c0_i32_0 : i32, i32
  }
  func.func @transform_5(%arg0: i32) -> (i32, i32) {
    %c0_i32 = arith.constant 0 : i32
    %c0_i32_0 = arith.constant 0 : i32
    %c0_i32_1 = arith.constant 0 : i32
    return %c0_i32, %c0_i32_0 : i32, i32
  }
  func.func @transform_6(%arg0: i32) -> (i32, i32, i32, i32) {
    %c0_i32 = arith.constant 0 : i32
    %c0_i32_0 = arith.constant 0 : i32
    %c0_i32_1 = arith.constant 0 : i32
    %c0_i32_2 = arith.constant 0 : i32
    return %arg0, %c0_i32, %c0_i32_0, %c0_i32_1 : i32, i32, i32, i32
  }
}

</mosaic_0001>

<bundles_post_ra>
// kernel: up_conv2d_segating.1
= control target key start
LH: loop header
LB: loop body
LE: loop exit
PB: predicated region body
PF: predicated region fallthrough
CT: control target
= control target key end

     0   :  { %s1548_s25 = smov 109   ;;  %s1549_s10 = smov 110   ;;  %v1551_v6 = vmov 0   ;;  %vm59_vm0 = vcmask 891904   ;;  %vm104_vm1 = vcmask 900096   ;;  %vm133_vm2 = vcmask 1039360   ;;  %s2282_s0 = inlined_call_operand.vmem [shape: bf16[2,16,432], index: 0, kind: input, shape index: {}]   ;;  %s2283_s1 = inlined_call_operand.vmem [shape: bf16[4,8,64], index: 1, kind: input, shape index: {}]   ;;  %s2284_s2 = inlined_call_operand.vmem [shape: f32[8,1], index: 2, kind: input, shape index: {}]   ;;  %s2285_s5 = inlined_call_operand.vmem [shape: f32[1,768], index: 5, kind: input, shape index: {}]   ;;  %s2286_s4 = inlined_call_operand.vmem [shape: f32[8,1], index: 4, kind: input, shape index: {}]   ;;  %s2287_s3 = inlined_call_operand.vmem [shape: bf16[8,8], index: 3, kind: input, shape index: {}]   ;;  %s2288_s6 = inlined_call_operand.vmem [shape: f32[2,4,8,384], index: 6, kind: output, shape index: {}]  }
   0x1   :  { %v1598_v0 = vld [vmem:[%s2282_s0 + $0x4] ss:$16 sps:$4 sm:$0xff]   ;;  %v1603_v1 = vld [vmem:[%s2282_s0] ss:$16 sps:$4 sm:$0xff]   ;;  %v1610_v2 = vld [vmem:[%s2282_s0 + $0x8] ss:$16 sps:$4 sm:$0xff]   ;;  %216 = vmatprep.mubr.bf16.mxu0 %v1551_v6  ;;  %257 = vmatprep.mubr.bf16.mxu1 %v1551_v6 }
   0x2   :  { %53 = vrot.lane.b32.xlu0 %v1598_v0, %s1548_s25  ;;  %51 = vrot.lane.b32.xlu1 %v1603_v1, %s1548_s25  ;;  %v1617_v3 = vld [vmem:[%s2282_s0 + $0x20] ss:$16 sps:$4 sm:$0xff]   ;;  %v1624_v4 = vld [vmem:[%s2282_s0 + $0x24] ss:$16 sps:$4 sm:$0xff]   ;;  %s1550_s11 = smov 127   ;;  %s1552_s16 = smov 108  }
   0x3   :  { %v1631_v5 = vld [vmem:[%s2282_s0 + $0xc] ss:$16 sps:$4 sm:$0xff]   ;;  %1526 = vset.pattern.permute.xlu0 %v1551_v6  ;;  %1527 = vset.pattern.permute.xlu1 %v1551_v6  ;;  %v1666_v7 = vld [vmem:[%s2282_s0 + $0x28] ss:$16 sps:$4 sm:$0xff]   ;;  %s1553_s17 = smov 126   ;;  %s1554_s18 = smov 91  }
   0x4   :  { %v1673_v8 = vld [vmem:[%s2282_s0 + $0x2c] ss:$16 sps:$4 sm:$0xff]   ;;  %s1555_s19 = smov 92   ;;  %v1803_v39 = vld [vmem:[%s2283_s1] sm:$0xf]  ;;  %vm180_vm3 = vcmask 523264  }
   0x5   :  { %v1542_v41 = vld [vmem:[%s2282_s0 + $0x8] ss:$16 sps:$4 sm:$0xff]   ;;  %vm392_vm4 = vcmask 883712   ;;  %s1556_s24 = smov 90   ;;  %vm465_vm5 = vcmask 1031168   ;;  %vm697_vm6 = vcmask 744448  }
   0x6   :  { %55 = vrot.lane.b32.xlu0 %v1610_v2, %s1548_s25  ;;  %82 = vrot.lane.b32.xlu1 %v1617_v3, %s1548_s25  ;;  %v1543_v62 = vld [vmem:[%s2282_s0 + $0x28] ss:$16 sps:$4 sm:$0xff]   ;;  %vm742_vm7 = vcmask 752640   ;;  %vm1002_vm8 = vcmask 736256   ;;  %vm1558_vm9 = vmmov 0   ;;  %vm1274_vm10 = vcmask 7168  }
   0x7   :  { %vm1289_vm11 = vcmask 1043456   ;;  %vm1285_vm12 = vcmask 64512  }
   0xa   :  { %84 = vrot.lane.b32.xlu0 %v1624_v4, %s1548_s25  ;;  %57 = vrot.lane.b32.xlu1 %v1631_v5, %s1548_s25 }
   0xe   :  { %98 = vrot.lane.b32.xlu0 %v1598_v0, %s1549_s10  ;;  %100 = vrot.lane.b32.xlu1 %v1610_v2, %s1549_s10 }
  0x12   :  { %96 = vrot.lane.b32.xlu0 %v1603_v1, %s1549_s10  ;;  %111 = vrot.lane.b32.xlu1 %v1617_v3, %s1549_s10 }
  0x16   :  { %113 = vrot.lane.b32.xlu0 %v1624_v4, %s1549_s10  ;;  %102 = vrot.lane.b32.xlu1 %v1631_v5, %s1549_s10 }
  0x1a   :  { %127 = vrot.lane.b32.xlu0 %v1598_v0, %s1550_s11  ;;  %129 = vrot.lane.b32.xlu1 %v1610_v2, %s1550_s11 }
  0x1e   :  { %125 = vrot.lane.b32.xlu0 %v1603_v1, %s1550_s11  ;;  %140 = vrot.lane.b32.xlu1 %v1617_v3, %s1550_s11 }
  0x22   :  { %142 = vrot.lane.b32.xlu0 %v1624_v4, %s1550_s11  ;;  %131 = vrot.lane.b32.xlu1 %v1631_v5, %s1550_s11 }
  0x26   :  { %86 = vrot.lane.b32.xlu0 %v1666_v7, %s1548_s25  ;;  %88 = vrot.lane.b32.xlu1 %v1673_v8, %s1548_s25 }
  0x2a   :  { %386 = vrot.lane.b32.xlu0 %v1598_v0, %s1552_s16  ;;  %388 = vrot.lane.b32.xlu1 %v1610_v2, %s1552_s16 }
  0x2e   :  { %384 = vrot.lane.b32.xlu0 %v1603_v1, %s1552_s16  ;;  %115 = vrot.lane.b32.xlu1 %v1666_v7, %s1549_s10 }
  0x32   :  { %117 = vrot.lane.b32.xlu0 %v1673_v8, %s1549_s10  ;;  %431 = vrot.lane.b32.xlu1 %v1598_v0, %s1548_s25 }
  0x36   :  { %433 = vrot.lane.b32.xlu0 %v1610_v2, %s1548_s25  ;;  %429 = vrot.lane.b32.xlu1 %v1603_v1, %s1548_s25 }
  0x3a   :  { %144 = vrot.lane.b32.xlu0 %v1666_v7, %s1550_s11  ;;  %146 = vrot.lane.b32.xlu1 %v1673_v8, %s1550_s11 }
  0x3e   :  { %459 = vrot.lane.b32.xlu0 %v1598_v0, %s1553_s17  ;;  %461 = vrot.lane.b32.xlu1 %v1610_v2, %s1553_s17 }
  0x42   :  { %457 = vrot.lane.b32.xlu0 %v1603_v1, %s1553_s17  ;;  %488 = vrot.lane.b32.xlu1 %v1598_v0, %s1550_s11 }
  0x46   :  { %490 = vrot.lane.b32.xlu0 %v1610_v2, %s1550_s11  ;;  %486 = vrot.lane.b32.xlu1 %v1603_v1, %s1550_s11 }
  0x4a   :  { %415 = vrot.lane.b32.xlu0 %v1617_v3, %s1552_s16  ;;  %417 = vrot.lane.b32.xlu1 %v1624_v4, %s1552_s16 }
  0x4e   :  { %390 = vrot.lane.b32.xlu0 %v1631_v5, %s1552_s16  ;;  %419 = vrot.lane.b32.xlu1 %v1666_v7, %s1552_s16 }
  0x52   :  { %421 = vrot.lane.b32.xlu0 %v1673_v8, %s1552_s16  ;;  %443 = vrot.lane.b32.xlu1 %v1617_v3, %s1548_s25 }
  0x56   :  { %445 = vrot.lane.b32.xlu0 %v1624_v4, %s1548_s25  ;;  %435 = vrot.lane.b32.xlu1 %v1631_v5, %s1548_s25 }
  0x5a   :  { %447 = vrot.lane.b32.xlu0 %v1666_v7, %s1548_s25  ;;  %449 = vrot.lane.b32.xlu1 %v1673_v8, %s1548_s25 }
  0x5e   :  { %472 = vrot.lane.b32.xlu0 %v1617_v3, %s1553_s17  ;;  %474 = vrot.lane.b32.xlu1 %v1624_v4, %s1553_s17 }
  0x62   :  { %463 = vrot.lane.b32.xlu0 %v1631_v5, %s1553_s17  ;;  %476 = vrot.lane.b32.xlu1 %v1666_v7, %s1553_s17 }
  0x66   :  { %478 = vrot.lane.b32.xlu0 %v1673_v8, %s1553_s17  ;;  %500 = vrot.lane.b32.xlu1 %v1617_v3, %s1550_s11 }
  0x6a   :  { %502 = vrot.lane.b32.xlu0 %v1624_v4, %s1550_s11  ;;  %492 = vrot.lane.b32.xlu1 %v1631_v5, %s1550_s11 }
  0x6e   :  { %504 = vrot.lane.b32.xlu0 %v1666_v7, %s1550_s11  ;;  %506 = vrot.lane.b32.xlu1 %v1673_v8, %s1550_s11 }
  0x72   :  { %691 = vrot.lane.b32.xlu0 %v1598_v0, %s1554_s18  ;;  %693 = vrot.lane.b32.xlu1 %v1610_v2, %s1554_s18 }
  0x74   :  { %v54_v9 = vpop.permute.xlu0 %53  ;;  %v52_v10 = vpop.permute.xlu1 %51 }
  0x75   :  { %v60_v14 = vsel %vm59_vm0, %v52_v10, %v54_v9 }
  0x76   :  { %689 = vrot.lane.b32.xlu0 %v1603_v1, %s1554_s18  ;;  %720 = vrot.lane.b32.xlu1 %v1617_v3, %s1554_s18 }
  0x78   :  { %v56_v11 = vpop.permute.xlu0 %55  ;;  %v83_v12 = vpop.permute.xlu1 %82 }
  0x79   :  { %v61_v13 = vsel %vm59_vm0, %v54_v9, %v56_v11 }
  0x7a   :  { %184 = vmatprep.subr.bf16.mxu0 %v61_v13  ;;  %722 = vrot.lane.b32.xlu0 %v1624_v4, %s1554_s18 }
  0x7b   :  { %695 = vrot.lane.b32.xlu1 %v1631_v5, %s1554_s18  ;;  %185 = vmatpush1.bf16.msra.mxu0 %v60_v14 }
  0x7c   :  { %v85_v15 = vpop.permute.xlu0 %84  ;;  %v58_v16 = vpop.permute.xlu1 %57 }
  0x7d   :  { %v90_v17 = vsel %vm59_vm0, %v83_v12, %v85_v15  ;;  %v62_v18 = vsel %vm59_vm0, %v56_v11, %v58_v16 }
  0x7e   :  { %736 = vrot.lane.b32.xlu0 %v1598_v0, %s1555_s19  ;;  %225 = vmatprep.subr.bf16.mxu1 %v90_v17 }
  0x7f   :  { %738 = vrot.lane.b32.xlu1 %v1610_v2, %s1555_s19  ;;  %226 = vmatpush1.bf16.msra.mxu1 %v62_v18 }
  0x80   :  { %v99_v19 = vpop.permute.xlu0 %98  ;;  %v101_v20 = vpop.permute.xlu1 %100 }
  0x81   :  { %v106_v21 = vsel %vm104_vm1, %v99_v19, %v101_v20 }
  0x82   :  { %734 = vrot.lane.b32.xlu0 %v1603_v1, %s1555_s19  ;;  %186 = vmatprep.subr.bf16.mxu0 %v106_v21 }
  0x83   :  { %749 = vrot.lane.b32.xlu1 %v1617_v3, %s1555_s19 }
  0x84   :  { %v97_v22 = vpop.permute.xlu0 %96  ;;  %v112_v23 = vpop.permute.xlu1 %111 }
  0x85   :  { %v105_v24 = vsel %vm104_vm1, %v97_v22, %v99_v19  ;;  %v1888_v19 = vld [vmem:[%s2283_s1 + $0x4] sm:$0xf] }
  0x86   :  { %751 = vrot.lane.b32.xlu0 %v1624_v4, %s1555_s19  ;;  %187 = vmatpush1.bf16.msra.mxu0 %v105_v24 }
  0x87   :  { %740 = vrot.lane.b32.xlu1 %v1631_v5, %s1555_s19 }
  0x88   :  { %v1773_v25 = vpop.permute.xlu0 %113  ;;  %v103_v26 = vpop.permute.xlu1 %102 }
  0x89   :  { %v119_v27 = vsel %vm104_vm1, %v112_v23, %v1773_v25  ;;  %v107_v28 = vsel %vm104_vm1, %v101_v20, %v103_v26 }
  0x8a   :  { %765 = vrot.lane.b32.xlu0 %v1598_v0, %s1548_s25  ;;  %227 = vmatprep.subr.bf16.mxu1 %v119_v27 }
  0x8b   :  { %767 = vrot.lane.b32.xlu1 %v1610_v2, %s1548_s25  ;;  %228 = vmatpush1.bf16.msra.mxu1 %v107_v28 }
  0x8c   :  { %v128_v29 = vpop.permute.xlu0 %127  ;;  %v130_v30 = vpop.permute.xlu1 %129 }
  0x8d   :  { %v135_v31 = vsel %vm133_vm2, %v128_v29, %v130_v30 }
  0x8e   :  { %763 = vrot.lane.b32.xlu0 %v1603_v1, %s1548_s25  ;;  %188 = vmatprep.subr.bf16.mxu0 %v135_v31 }
  0x8f   :  { %777 = vrot.lane.b32.xlu1 %v1617_v3, %s1548_s25 }
  0x90   :  { %v126_v32 = vpop.permute.xlu0 %125  ;;  %v141_v33 = vpop.permute.xlu1 %140 }
  0x91   :  { %v134_v34 = vsel %vm133_vm2, %v126_v32, %v128_v29 }
  0x92   :  { %779 = vrot.lane.b32.xlu0 %v1624_v4, %s1548_s25  ;;  %189 = vmatpush1.bf16.msra.mxu0 %v134_v34 }
  0x93   :  { %769 = vrot.lane.b32.xlu1 %v1631_v5, %s1548_s25  ;;  %190 = vmatprep.subr.bf16.mxu0 %v1598_v0 }
  0x94   :  { %v143_v35 = vpop.permute.xlu0 %142  ;;  %v132_v36 = vpop.permute.xlu1 %131 }
  0x95   :  { %v148_v37 = vsel %vm133_vm2, %v141_v33, %v143_v35  ;;  %v136_v38 = vsel %vm133_vm2, %v130_v30, %v132_v36 }
  0x96   :  { %793 = vrot.lane.b32.xlu0 %v1598_v0, %s1549_s10  ;;  %229 = vmatprep.subr.bf16.mxu1 %v148_v37 }
  0x97   :  { %795 = vrot.lane.b32.xlu1 %v1610_v2, %s1549_s10  ;;  %191 = vmatpush1.bf16.msra.mxu0 %v1603_v1 }
  0x98   :  { %230 = vmatpush1.bf16.msra.mxu1 %v136_v38  ;;  %v87_v40 = vpop.permute.xlu0 %86  ;;  %v89_v42 = vpop.permute.xlu1 %88 }
  0x99   :  { %v91_v43 = vsel %vm59_vm0, %v85_v15, %v87_v40  ;;  %231 = vmatprep.subr.bf16.mxu1 %v1617_v3  ;;  %v92_v44 = vsel %vm59_vm0, %v87_v40, %v89_v42 }
  0x9a   :  { %791 = vrot.lane.b32.xlu0 %v1603_v1, %s1549_s10  ;;  %1441 = vmatmul.mubr.msk.bf16.vlgmr.msra.gmra.mrb[0].mxu0 %vm180_vm3, %v1803_v39 }
  0x9b   :  { %805 = vrot.lane.b32.xlu1 %v1617_v3, %s1549_s10  ;;  %266 = vmatprep.subr.bf16.mxu0 %v92_v44 }
  0x9c   :  { %267 = vmatpush1.bf16.msra.mxu0 %v91_v43  ;;  %v387_v45 = vpop.permute.xlu0 %386  ;;  %232 = vmatpush1.bf16.msra.mxu1 %v1542_v41  ;;  %v1817_v46 = vpop.permute.xlu1 %388 }
  0x9d   :  { %298 = vmatprep.mubr.bf16.mxu0 %v1551_v6  ;;  %v394_v47 = vsel %vm392_vm4, %v387_v45, %v1817_v46 }
  0x9e   :  { %807 = vrot.lane.b32.xlu0 %v1624_v4, %s1549_s10  ;;  %519 = vmatprep.subr.bf16.mxu1 %v394_v47 }
  0x9f   :  { %797 = vrot.lane.b32.xlu1 %v1631_v5, %s1549_s10  ;;  %1442 = vmatmul.mubr.msk.bf16.vlgmr.msra.gmra.mrb[0].mxu1 %vm180_vm3, %v1803_v39 }
  0xa0   :  { %v385_v48 = vpop.permute.xlu0 %384  ;;  %v116_v50 = vpop.permute.xlu1 %115  ;;  %551 = vmatprep.mubr.bf16.mxu1 %v1551_v6 }
  0xa1   :  { %v393_v49 = vsel %vm392_vm4, %v385_v48, %v387_v45  ;;  %v120_v54 = vsel %vm104_vm1, %v1773_v25, %v116_v50 }
  0xa2   :  { %724 = vrot.lane.b32.xlu0 %v1666_v7, %s1554_s18  ;;  %520 = vmatpush1.bf16.msra.mxu1 %v393_v49 }
  0xa3   :  { %726 = vrot.lane.b32.xlu1 %v1673_v8, %s1554_s18 }
  0xa4   :  { %v118_v51 = vpop.permute.xlu0 %117  ;;  %v432_v52 = vpop.permute.xlu1 %431 }
  0xa5   :  { %v121_v53 = vsel %vm104_vm1, %v116_v50, %v118_v51 }
  0xa6   :  { %996 = vrot.lane.b32.xlu0 %v1598_v0, %s1556_s24  ;;  %268 = vmatprep.subr.bf16.mxu0 %v121_v53 }
  0xa7   :  { %998 = vrot.lane.b32.xlu1 %v1610_v2, %s1556_s24  ;;  %269 = vmatpush1.bf16.msra.mxu0 %v120_v54 }
  0xa8   :  { %v1841_v55 = vpop.permute.xlu0 %433  ;;  %v430_v56 = vpop.permute.xlu1 %429 }
  0xa9   :  { %v438_v57 = vsel %vm59_vm0, %v432_v52, %v1841_v55  ;;  %v437_v58 = vsel %vm59_vm0, %v430_v56, %v432_v52 }
  0xaa   :  { %994 = vrot.lane.b32.xlu0 %v1603_v1, %s1556_s24  ;;  %521 = vmatprep.subr.bf16.mxu1 %v438_v57 }
  0xab   :  { %753 = vrot.lane.b32.xlu1 %v1666_v7, %s1555_s19  ;;  %522 = vmatpush1.bf16.msra.mxu1 %v437_v58 }
  0xac   :  { %v145_v59 = vpop.permute.xlu0 %144  ;;  %v147_v60 = vpop.permute.xlu1 %146 }
  0xad   :  { %v149_v61 = vsel %vm133_vm2, %v143_v35, %v145_v59  ;;  %v150_v63 = vsel %vm133_vm2, %v145_v59, %v147_v60 }
  0xae   :  { %755 = vrot.lane.b32.xlu0 %v1673_v8, %s1555_s19  ;;  %270 = vmatprep.subr.bf16.mxu0 %v150_v63 }
  0xaf   :  { %1041 = vrot.lane.b32.xlu1 %v1598_v0, %s1554_s18  ;;  %271 = vmatpush1.bf16.msra.mxu0 %v149_v61 }
  0xb0   :  { %v460_v9 = vpop.permute.xlu0 %459  ;;  %v1859_v10 = vpop.permute.xlu1 %461  ;;  %272 = vmatprep.subr.bf16.mxu0 %v1543_v62 }
  0xb1   :  { %v467_v11 = vsel %vm465_vm5, %v460_v9, %v1859_v10 }
  0xb2   :  { %1043 = vrot.lane.b32.xlu0 %v1610_v2, %s1554_s18  ;;  %523 = vmatprep.subr.bf16.mxu1 %v467_v11 }
  0xb3   :  { %1039 = vrot.lane.b32.xlu1 %v1603_v1, %s1554_s18  ;;  %273 = vmatpush1.bf16.msra.mxu0 %v1624_v4 }
  0xb4   :  { %v458_v12 = vpop.permute.xlu0 %457  ;;  %v489_v14 = vpop.permute.xlu1 %488 }
  0xb5   :  { %v466_v13 = vsel %vm465_vm5, %v458_v12, %v460_v9 }
  0xb6   :  { %781 = vrot.lane.b32.xlu0 %v1666_v7, %s1548_s25  ;;  %524 = vmatpush1.bf16.msra.mxu1 %v466_v13 }
  0xb7   :  { %783 = vrot.lane.b32.xlu1 %v1673_v8, %s1548_s25  ;;  %1443 = vmatmul.mubr.msk.bf16.vlgmr.msra.gmra.mrb[4].mxu0 %vm180_vm3, %v1803_v39 }
  0xb8   :  { %v1875_v15 = vpop.permute.xlu0 %490  ;;  %592 = vmatprep.mubr.bf16.mxu0 %v1551_v6  ;;  %v487_v16 = vpop.permute.xlu1 %486 }
  0xb9   :  { %v495_v17 = vsel %vm133_vm2, %v489_v14, %v1875_v15  ;;  %v494_v18 = vsel %vm133_vm2, %v487_v16, %v489_v14 }
  0xba   :  { %1069 = vrot.lane.b32.xlu0 %v1598_v0, %s1552_s16  ;;  %525 = vmatprep.subr.bf16.mxu1 %v495_v17 }
  0xbb   :  { %1071 = vrot.lane.b32.xlu1 %v1610_v2, %s1552_s16  ;;  %526 = vmatpush1.bf16.msra.mxu1 %v494_v18 }
  0xbc   :  { %v416_v20 = vpop.permute.xlu0 %415  ;;  %v418_v21 = vpop.permute.xlu1 %417 }
  0xbd   :  { %v423_v22 = vsel %vm392_vm4, %v416_v20, %v418_v21 }
  0xbe   :  { %1067 = vrot.lane.b32.xlu0 %v1603_v1, %s1552_s16  ;;  %1457 = vmatmul.mubr.msk.bf16.vlgmr.msra.gmra.mrb[4].mxu1 %vm180_vm3, %v1888_v19 }
  0xbf   :  { %809 = vrot.lane.b32.xlu1 %v1666_v7, %s1549_s10  ;;  %560 = vmatprep.subr.bf16.mxu0 %v423_v22 }
  0xc0   :  { %v391_v23 = vpop.permute.xlu0 %390  ;;  %633 = vmatprep.mubr.bf16.mxu1 %v1551_v6  ;;  %v420_v25 = vpop.permute.xlu1 %419 }
  0xc1   :  { %v395_v24 = vsel %vm392_vm4, %v1817_v46, %v391_v23  ;;  %v424_v29 = vsel %vm392_vm4, %v418_v21, %v420_v25 }
  0xc2   :  { %811 = vrot.lane.b32.xlu0 %v1673_v8, %s1549_s10  ;;  %561 = vmatpush1.bf16.msra.mxu0 %v395_v24 }
  0xc3   :  { %1097 = vrot.lane.b32.xlu1 %v1598_v0, %s1548_s25 }
  0xc4   :  { %v422_v26 = vpop.permute.xlu0 %421  ;;  %v444_v27 = vpop.permute.xlu1 %443 }
  0xc5   :  { %v425_v28 = vsel %vm392_vm4, %v420_v25, %v422_v26 }
  0xc6   :  { %1099 = vrot.lane.b32.xlu0 %v1610_v2, %s1548_s25  ;;  %601 = vmatprep.subr.bf16.mxu1 %v425_v28 }
  0xc7   :  { %1095 = vrot.lane.b32.xlu1 %v1603_v1, %s1548_s25  ;;  %602 = vmatpush1.bf16.msra.mxu1 %v424_v29 }
  0xc8   :  { %v446_v30 = vpop.permute.xlu0 %445  ;;  %v436_v31 = vpop.permute.xlu1 %435 }
  0xc9   :  { %v451_v32 = vsel %vm59_vm0, %v444_v27, %v446_v30  ;;  %v439_v0 = vsel %vm59_vm0, %v1841_v55, %v436_v31 }
  0xca   :  { %1025 = vrot.lane.b32.xlu0 %v1617_v3, %s1556_s24  ;;  %562 = vmatprep.subr.bf16.mxu0 %v451_v32 }
  0xcb   :  { %1027 = vrot.lane.b32.xlu1 %v1624_v4, %s1556_s24  ;;  %563 = vmatpush1.bf16.msra.mxu0 %v439_v0 }
  0xcc   :  { %v448_v2 = vpop.permute.xlu0 %447  ;;  %v450_v1 = vpop.permute.xlu1 %449 }
  0xcd   :  { %v452_v33 = vsel %vm59_vm0, %v446_v30, %v448_v2  ;;  %v453_v34 = vsel %vm59_vm0, %v448_v2, %v450_v1  ;;  %v1991_v30 = vld [vmem:[%s2283_s1 + $0x8] sm:$0xf] }
  0xce   :  { %1000 = vrot.lane.b32.xlu0 %v1631_v5, %s1556_s24  ;;  %603 = vmatprep.subr.bf16.mxu1 %v453_v34 }
  0xcf   :  { %1029 = vrot.lane.b32.xlu1 %v1666_v7, %s1556_s24  ;;  %604 = vmatpush1.bf16.msra.mxu1 %v452_v33 }
  0xd0   :  { %v473_v35 = vpop.permute.xlu0 %472  ;;  %v475_v36 = vpop.permute.xlu1 %474 }
  0xd1   :  { %v480_v37 = vsel %vm465_vm5, %v473_v35, %v475_v36 }
  0xd2   :  { %1031 = vrot.lane.b32.xlu0 %v1673_v8, %s1556_s24  ;;  %564 = vmatprep.subr.bf16.mxu0 %v480_v37 }
  0xd3   :  { %1053 = vrot.lane.b32.xlu1 %v1617_v3, %s1554_s18 }
  0xd4   :  { %v464_v38 = vpop.permute.xlu0 %463  ;;  %v477_v40 = vpop.permute.xlu1 %476 }
  0xd5   :  { %v468_v39 = vsel %vm465_vm5, %v1859_v10, %v464_v38  ;;  %v481_v44 = vsel %vm465_vm5, %v475_v36, %v477_v40 }
  0xd6   :  { %1055 = vrot.lane.b32.xlu0 %v1624_v4, %s1554_s18  ;;  %565 = vmatpush1.bf16.msra.mxu0 %v468_v39 }
  0xd7   :  { %1045 = vrot.lane.b32.xlu1 %v1631_v5, %s1554_s18 }
  0xd8   :  { %v479_v41 = vpop.permute.xlu0 %478  ;;  %v501_v42 = vpop.permute.xlu1 %500 }
  0xd9   :  { %v482_v43 = vsel %vm465_vm5, %v477_v40, %v479_v41 }
  0xda   :  { %1057 = vrot.lane.b32.xlu0 %v1666_v7, %s1554_s18  ;;  %605 = vmatprep.subr.bf16.mxu1 %v482_v43 }
  0xdb   :  { %1059 = vrot.lane.b32.xlu1 %v1673_v8, %s1554_s18  ;;  %606 = vmatpush1.bf16.msra.mxu1 %v481_v44 }
  0xdc   :  { %v503_v45 = vpop.permute.xlu0 %502  ;;  %v493_v46 = vpop.permute.xlu1 %492 }
  0xdd   :  { %v508_v47 = vsel %vm133_vm2, %v501_v42, %v503_v45  ;;  %v496_v48 = vsel %vm133_vm2, %v1875_v15, %v493_v46 }
  0xde   :  { %1081 = vrot.lane.b32.xlu0 %v1617_v3, %s1552_s16  ;;  %566 = vmatprep.subr.bf16.mxu0 %v508_v47 }
  0xdf   :  { %1083 = vrot.lane.b32.xlu1 %v1624_v4, %s1552_s16  ;;  %567 = vmatpush1.bf16.msra.mxu0 %v496_v48 }
  0xe0   :  { %v505_v49 = vpop.permute.xlu0 %504  ;;  %v507_v51 = vpop.permute.xlu1 %506 }
  0xe1   :  { %v509_v50 = vsel %vm133_vm2, %v503_v45, %v505_v49  ;;  %v510_v52 = vsel %vm133_vm2, %v505_v49, %v507_v51 }
  0xe2   :  { %1073 = vrot.lane.b32.xlu0 %v1631_v5, %s1552_s16  ;;  %1458 = vmatmul.mubr.msk.bf16.vlgmr.msra.gmra.mrb[8].mxu0 %vm180_vm3, %v1888_v19 }
  0xe3   :  { %1085 = vrot.lane.b32.xlu1 %v1666_v7, %s1552_s16  ;;  %607 = vmatprep.subr.bf16.mxu1 %v510_v52 }
  0xe4   :  { %608 = vmatpush1.bf16.msra.mxu1 %v509_v50  ;;  %v692_v53 = vpop.permute.xlu0 %691  ;;  %856 = vmatprep.mubr.bf16.mxu0 %v1551_v6  ;;  %v694_v54 = vpop.permute.xlu1 %693 }
  0xe5   :  { %v699_v55 = vsel %vm697_vm6, %v692_v53, %v694_v54 }
  0xe6   :  { %1087 = vrot.lane.b32.xlu0 %v1673_v8, %s1552_s16  ;;  %824 = vmatprep.subr.bf16.mxu0 %v699_v55 }
  0xe7   :  { %1109 = vrot.lane.b32.xlu1 %v1617_v3, %s1548_s25  ;;  %1459 = vmatmul.mubr.msk.bf16.vlgmr.msra.gmra.mrb[8].mxu1 %vm180_vm3, %v1888_v19 }
  0xe8   :  { %v690_v56 = vpop.permute.xlu0 %689  ;;  %v721_v58 = vpop.permute.xlu1 %720  ;;  %897 = vmatprep.mubr.bf16.mxu1 %v1551_v6 }
  0xe9   :  { %v698_v57 = vsel %vm697_vm6, %v690_v56, %v692_v53 }
  0xea   :  { %1111 = vrot.lane.b32.xlu0 %v1624_v4, %s1548_s25  ;;  %825 = vmatpush1.bf16.msra.mxu0 %v698_v57  ;;  %v24_v4 = vld [vmem:[%s2284_s2] sm:$0xff] }
  0xeb   :  { %1101 = vrot.lane.b32.xlu1 %v1631_v5, %s1548_s25 }
  0xec   :  { %v723_v59 = vpop.permute.xlu0 %722 }
  0xed   :  { %v696_v60 = vpop.permute.xlu1 %695  ;;  %v728_v3 = vsel %vm697_vm6, %v721_v58, %v723_v59 }
  0xee   :  { %v700_v61 = vsel %vm697_vm6, %v694_v54, %v696_v60  ;;  %1113 = vrot.lane.b32.xlu0 %v1666_v7, %s1548_s25  ;;  %865 = vmatprep.subr.bf16.mxu1 %v728_v3 }
  0xef   :  { %1115 = vrot.lane.b32.xlu1 %v1673_v8, %s1548_s25  ;;  %866 = vmatpush1.bf16.msra.mxu1 %v700_v61 }
  0xf0   :  { %v737_v5 = vpop.permute.xlu0 %736 }
  0xf1   :  { %v739_v62 = vpop.permute.xlu1 %738 }
  0xf2   :  { %v744_v63 = vsel %vm742_vm7, %v737_v5, %v739_v62  ;;  %177 = vperm.xlu0 %1526, %v24_v4  }
  0xf3   :  { %826 = vmatprep.subr.bf16.mxu0 %v744_v63 }
  0xf4   :  { %v735_v9 = vpop.permute.xlu0 %734 }
  0xf5   :  { %v743_v10 = vsel %vm742_vm7, %v735_v9, %v737_v5  ;;  %v750_v7 = vpop.permute.xlu1 %749 }
  0xf6   :  { %827 = vmatpush1.bf16.msra.mxu0 %v743_v10  ;;  %v1488_v10 = vld [vmem:[%s2283_s1 + $0xc] sm:$0xf] }
  0xf8   :  { %v752_v11 = vpop.permute.xlu0 %751 }
  0xf9   :  { %v741_v12 = vpop.permute.xlu1 %740  ;;  %v757_v8 = vsel %vm742_vm7, %v750_v7, %v752_v11 }
  0xfa   :  { %v745_v13 = vsel %vm742_vm7, %v739_v62, %v741_v12  ;;  %867 = vmatprep.subr.bf16.mxu1 %v757_v8 }
  0xfb   :  { %868 = vmatpush1.bf16.msra.mxu1 %v745_v13 }
  0xfc   :  { %v766_v14 = vpop.permute.xlu0 %765 }
  0xfd   :  { %v768_v15 = vpop.permute.xlu1 %767 }
  0xfe   :  { %v772_v16 = vsel %vm59_vm0, %v766_v14, %v768_v15 }
  0xff   :  { %828 = vmatprep.subr.bf16.mxu0 %v772_v16 }
 0x100   :  { %v764_v17 = vpop.permute.xlu0 %763 }
 0x101   :  { %v771_v18 = vsel %vm59_vm0, %v764_v17, %v766_v14  ;;  %v778_v19 = vpop.permute.xlu1 %777 }
 0x102   :  { %829 = vmatpush1.bf16.msra.mxu0 %v771_v18 }
 0x104   :  { %v780_v20 = vpop.permute.xlu0 %779 }
 0x105   :  { %v770_v21 = vpop.permute.xlu1 %769  ;;  %v785_v22 = vsel %vm59_vm0, %v778_v19, %v780_v20 }
 0x106   :  { %v773_v23 = vsel %vm59_vm0, %v768_v15, %v770_v21  ;;  %869 = vmatprep.subr.bf16.mxu1 %v785_v22 }
 0x107   :  { %870 = vmatpush1.bf16.msra.mxu1 %v773_v23 }
 0x108   :  { %v794_v24 = vpop.permute.xlu0 %793 }
 0x109   :  { %v796_v25 = vpop.permute.xlu1 %795 }
 0x10a   :  { %v800_v26 = vsel %vm104_vm1, %v794_v24, %v796_v25 }
 0x10b   :  { %830 = vmatprep.subr.bf16.mxu0 %v800_v26 }
 0x10c   :  { %v792_v27 = vpop.permute.xlu0 %791 }
 0x10d   :  { %v799_v28 = vsel %vm104_vm1, %v792_v27, %v794_v24  ;;  %v806_v29 = vpop.permute.xlu1 %805 }
 0x10e   :  { %831 = vmatpush1.bf16.msra.mxu0 %v799_v28 }
 0x110   :  { %v808_v31 = vpop.permute.xlu0 %807 }
 0x111   :  { %v798_v32 = vpop.permute.xlu1 %797  ;;  %v813_v0 = vsel %vm104_vm1, %v806_v29, %v808_v31  ;;  %1473 = vmatmul.mubr.msk.bf16.vlgmr.msra.gmra.mrb[12].mxu0 %vm180_vm3, %v1991_v30 }
 0x112   :  { %v801_v2 = vsel %vm104_vm1, %v796_v25, %v798_v32  ;;  %871 = vmatprep.subr.bf16.mxu1 %v813_v0  ;;  %938 = vmatprep.mubr.bf16.mxu0 %v1551_v6 }
 0x113   :  { %872 = vmatpush1.bf16.msra.mxu1 %v801_v2 }
 0x114   :  { %v725_v33 = vpop.permute.xlu0 %724 }
 0x115   :  { %v729_v1 = vsel %vm697_vm6, %v723_v59, %v725_v33  ;;  %v727_v34 = vpop.permute.xlu1 %726 }
 0x116   :  { %v730_v35 = vsel %vm697_vm6, %v725_v33, %v727_v34  ;;  %1474 = vmatmul.mubr.msk.bf16.vlgmr.msra.gmra.mrb[12].mxu1 %vm180_vm3, %v1991_v30 }
 0x117   :  { %906 = vmatprep.subr.bf16.mxu0 %v730_v35  ;;  %1160 = vmatprep.mubr.bf16.mxu1 %v1551_v6 }
 0x118   :  { %907 = vmatpush1.bf16.msra.mxu0 %v729_v1  ;;  %v997_v36 = vpop.permute.xlu0 %996 }
 0x119   :  { %v999_v37 = vpop.permute.xlu1 %998 }
 0x11a   :  { %v1004_v38 = vsel %vm1002_vm8, %v997_v36, %v999_v37 }
 0x11b   :  { %1128 = vmatprep.subr.bf16.mxu1 %v1004_v38 }
 0x11c   :  { %v995_v39 = vpop.permute.xlu0 %994 }
 0x11d   :  { %v1003_v40 = vsel %vm1002_vm8, %v995_v39, %v997_v36  ;;  %v754_v41 = vpop.permute.xlu1 %753 }
 0x11e   :  { %1129 = vmatpush1.bf16.msra.mxu1 %v1003_v40  ;;  %v758_v45 = vsel %vm742_vm7, %v752_v11, %v754_v41 }
 0x120   :  { %v756_v42 = vpop.permute.xlu0 %755 }
 0x121   :  { %v1042_v43 = vpop.permute.xlu1 %1041  ;;  %v759_v44 = vsel %vm742_vm7, %v754_v41, %v756_v42  ;;  %v308_v41 = vlaneseq }
 0x122   :  { %908 = vmatprep.subr.bf16.mxu0 %v759_v44 }
 0x123   :  { %909 = vmatpush1.bf16.msra.mxu0 %v758_v45  ;;  %v309_v42 = vshrl.u32 %v308_v41, 7 }
 0x124   :  { %v1044_v46 = vpop.permute.xlu0 %1043 }
 0x125   :  { %v1040_v47 = vpop.permute.xlu1 %1039  ;;  %v1048_v48 = vsel %vm697_vm6, %v1042_v43, %v1044_v46  ;;  %v314_v44 = vsub.s32 1, %v309_v42 }
 0x126   :  { %v1047_v49 = vsel %vm697_vm6, %v1040_v47, %v1042_v43  ;;  %1130 = vmatprep.subr.bf16.mxu1 %v1048_v48  ;;  %v310_v43 = vsub.s32 0, %v309_v42  ;;  %v318_v48 = vsub.s32 2, %v309_v42 }
 0x127   :  { %1131 = vmatpush1.bf16.msra.mxu1 %v1047_v49 }
 0x128   :  { %v782_v50 = vpop.permute.xlu0 %781 }
 0x129   :  { %v786_v51 = vsel %vm59_vm0, %v780_v20, %v782_v50  ;;  %v784_v52 = vpop.permute.xlu1 %783 }
 0x12a   :  { %v787_v53 = vsel %vm59_vm0, %v782_v50, %v784_v52 }
 0x12b   :  { %910 = vmatprep.subr.bf16.mxu0 %v787_v53 }
 0x12c   :  { %911 = vmatpush1.bf16.msra.mxu0 %v786_v51  ;;  %v1070_v54 = vpop.permute.xlu0 %1069 }
 0x12d   :  { %v1072_v55 = vpop.permute.xlu1 %1071 }
 0x12e   :  { %v1076_v56 = vsel %vm392_vm4, %v1070_v54, %v1072_v55 }
 0x12f   :  { %1132 = vmatprep.subr.bf16.mxu1 %v1076_v56 }
 0x130   :  { %v1068_v57 = vpop.permute.xlu0 %1067 }
 0x131   :  { %v1075_v58 = vsel %vm392_vm4, %v1068_v57, %v1070_v54  ;;  %v810_v59 = vpop.permute.xlu1 %809 }
 0x132   :  { %1133 = vmatpush1.bf16.msra.mxu1 %v1075_v58  ;;  %v814_v4 = vsel %vm104_vm1, %v808_v31, %v810_v59 }
 0x134   :  { %v812_v60 = vpop.permute.xlu0 %811 }
 0x135   :  { %v1098_v3 = vpop.permute.xlu1 %1097  ;;  %v815_v61 = vsel %vm104_vm1, %v810_v59, %v812_v60 }
 0x136   :  { %912 = vmatprep.subr.bf16.mxu0 %v815_v61 }
 0x137   :  { %913 = vmatpush1.bf16.msra.mxu0 %v814_v4 }
 0x138   :  { %v1100_v5 = vpop.permute.xlu0 %1099 }
 0x139   :  { %v1096_v62 = vpop.permute.xlu1 %1095  ;;  %v1104_v63 = vsel %vm59_vm0, %v1098_v3, %v1100_v5 }
 0x13a   :  { %v1103_v9 = vsel %vm59_vm0, %v1096_v62, %v1098_v3  ;;  %1475 = vmatmul.mubr.msk.bf16.vlgmr.msra.gmra.mrb[16].mxu0 %vm180_vm3, %v1991_v30  ;;  %1134 = vmatprep.subr.bf16.mxu1 %v1104_v63 }
 0x13b   :  { %1135 = vmatpush1.bf16.msra.mxu1 %v1103_v9  ;;  %1201 = vmatprep.mubr.bf16.mxu0 %v1551_v6  ;;  %v322_v9 = vsub.s32 3, %v309_v42 }
 0x13c   :  { %v1026_v7 = vpop.permute.xlu0 %1025 }
 0x13d   :  { %v1028_v11 = vpop.permute.xlu1 %1027 }
 0x13e   :  { %v1033_v12 = vsel %vm1002_vm8, %v1026_v7, %v1028_v11  ;;  %1489 = vmatmul.mubr.msk.bf16.vlgmr.msra.gmra.mrb[16].mxu1 %vm180_vm3, %v1488_v10  ;;  %v330_v7 = vsub.s32 5, %v309_v42 }
 0x13f   :  { %1169 = vmatprep.subr.bf16.mxu0 %v1033_v12  ;;  %1242 = vmatprep.mubr.bf16.mxu1 %v1551_v6 }
 0x140   :  { %v1001_v8 = vpop.permute.xlu0 %1000 }
 0x141   :  { %v1005_v13 = vsel %vm1002_vm8, %v999_v37, %v1001_v8  ;;  %v1030_v14 = vpop.permute.xlu1 %1029 }
 0x142   :  { %1170 = vmatpush1.bf16.msra.mxu0 %v1005_v13  ;;  %v1034_v18 = vsel %vm1002_vm8, %v1028_v11, %v1030_v14 }
 0x144   :  { %v1032_v15 = vpop.permute.xlu0 %1031 }
 0x145   :  { %v1054_v16 = vpop.permute.xlu1 %1053  ;;  %v1035_v17 = vsel %vm1002_vm8, %v1030_v14, %v1032_v15 }
 0x146   :  { %1210 = vmatprep.subr.bf16.mxu1 %v1035_v17 }
 0x147   :  { %1211 = vmatpush1.bf16.msra.mxu1 %v1034_v18 }
 0x148   :  { %v1056_v19 = vpop.permute.xlu0 %1055 }
 0x149   :  { %v1046_v20 = vpop.permute.xlu1 %1045  ;;  %v1061_v21 = vsel %vm697_vm6, %v1054_v16, %v1056_v19 }
 0x14a   :  { %v1049_v22 = vsel %vm697_vm6, %v1044_v46, %v1046_v20  ;;  %1171 = vmatprep.subr.bf16.mxu0 %v1061_v21  ;;  %v25_v46 = vld [vmem:[%s2285_s5] sm:$0x3f] }
 0x14b   :  { %1172 = vmatpush1.bf16.msra.mxu0 %v1049_v22  ;;  %v2046_v51 = vrot.slane %v25_v46, %v310_v43  ;;  %v2048_v52 = vrot.slane %v25_v46, %v314_v44  ;;  %v2052_v54 = vrot.slane %v25_v46, %v318_v48  ;;  %v2069_v11 = vrot.slane %v25_v46, %v322_v9 }
 0x14c   :  { %v1058_v6 = vpop.permute.xlu0 %1057  ;;  %v2076_v14 = vrot.slane %v25_v46, %v330_v7 }
 0x14d   :  { %v1062_v23 = vsel %vm697_vm6, %v1056_v19, %v1058_v6  ;;  %v1060_v24 = vpop.permute.xlu1 %1059 }
 0x14e   :  { %v1063_v25 = vsel %vm697_vm6, %v1058_v6, %v1060_v24 }
 0x14f   :  { %1212 = vmatprep.subr.bf16.mxu1 %v1063_v25 }
 0x150   :  { %1213 = vmatpush1.bf16.msra.mxu1 %v1062_v23  ;;  %v1082_v26 = vpop.permute.xlu0 %1081 }
 0x151   :  { %v1084_v27 = vpop.permute.xlu1 %1083 }
 0x152   :  { %v1089_v28 = vsel %vm392_vm4, %v1082_v26, %v1084_v27 }
 0x153   :  { %1173 = vmatprep.subr.bf16.mxu0 %v1089_v28 }
 0x154   :  { %v1074_v29 = vpop.permute.xlu0 %1073 }
 0x155   :  { %v1077_v30 = vsel %vm392_vm4, %v1072_v55, %v1074_v29  ;;  %v1086_v31 = vpop.permute.xlu1 %1085 }
 0x156   :  { %1174 = vmatpush1.bf16.msra.mxu0 %v1077_v30  ;;  %v1090_v33 = vsel %vm392_vm4, %v1084_v27, %v1086_v31 }
 0x158   :  { %v1088_v32 = vpop.permute.xlu0 %1087 }
 0x159   :  { %v1110_v0 = vpop.permute.xlu1 %1109  ;;  %v1091_v2 = vsel %vm392_vm4, %v1086_v31, %v1088_v32 }
 0x15a   :  { %1214 = vmatprep.subr.bf16.mxu1 %v1091_v2 }
 0x15b   :  { %1215 = vmatpush1.bf16.msra.mxu1 %v1090_v33 }
 0x15c   :  { %v1112_v1 = vpop.permute.xlu0 %1111 }
 0x15d   :  { %v1102_v34 = vpop.permute.xlu1 %1101  ;;  %v1117_v35 = vsel %vm59_vm0, %v1110_v0, %v1112_v1 }
 0x15e   :  { %v1105_v36 = vsel %vm59_vm0, %v1100_v5, %v1102_v34  ;;  %1175 = vmatprep.subr.bf16.mxu0 %v1117_v35 }
 0x15f   :  { %1176 = vmatpush1.bf16.msra.mxu0 %v1105_v36 }
 0x160   :  { %v1114_v37 = vpop.permute.xlu0 %1113 }
 0x161   :  { %v1118_v38 = vsel %vm59_vm0, %v1112_v1, %v1114_v37  ;;  %v1116_v39 = vpop.permute.xlu1 %1115 }
 0x162   :  { %1490 = vmatmul.mubr.msk.bf16.vlgmr.msra.gmra.mrb[20].mxu0 %vm180_vm3, %v1488_v10  ;;  %v1119_v40 = vsel %vm59_vm0, %v1114_v37, %v1116_v39 }
 0x163   :  { %1216 = vmatprep.subr.bf16.mxu1 %v1119_v40 }
 0x164   :  { %1217 = vmatpush1.bf16.msra.mxu1 %v1118_v38 }
 0x167   :  { %1491 = vmatmul.mubr.msk.bf16.vlgmr.msra.gmra.mrb[20].mxu1 %vm180_vm3, %v1488_v10  ;;  %v326_v10 = vsub.s32 4, %v309_v42 }
 0x169   :  { %v2074_v8 = vrot.slane %v25_v46, %v326_v10 }
 0x16d   :  { %v218_v45 = vpop.f32.mrb[0].mxu0 }
 0x16e   :  { %v220_v47 = vpop.f32.mrb[1].mxu0 }
 0x16f   :  { %v222_v49 = vpop.f32.mrb[2].mxu0 }
 0x170   :  { %v223_v50 = vpop.f32.mrb[3].mxu0 }
 0x171   :  { %v2050_v53 = vpop.permute.xlu0 %177 }
 0x172   :  { %v2055_v55 = vadd.f32 %v218_v45, %v2050_v53  ;;  %v2058_v56 = vadd.f32 %v220_v47, %v2050_v53  ;;  %v259_v57 = vpop.f32.mrb[0].mxu1 }
 0x173   :  { %v261_v58 = vpop.f32.mrb[1].mxu1  ;;  %v2061_v59 = vadd.f32 %v259_v57, %v2050_v53 }
 0x174   :  { %v338_v60 = vmul.f32 %v2046_v51, %v2055_v55  ;;  %v339_v3 = vmul.f32 %v2048_v52, %v2058_v56  ;;  %v263_v61 = vpop.f32.mrb[2].mxu1  ;;  %v2072_v12 = vadd.f32 %v261_v58, %v2050_v53 }
 0x175   :  { %v264_v4 = vpop.f32.mrb[3].mxu1  ;;  %v340_v5 = vmul.f32 %v2052_v54, %v2061_v59 }
 0x176   :  { %v344_v62 = vadd.f32 %v339_v3, %v338_v60  ;;  %v341_v17 = vmul.f32 %v2069_v11, %v2072_v12 }
 0x178   :  { %v345_v63 = vadd.f32 %v344_v62, %v340_v5 }
 0x17a   :  { %346 = vadd.xlane.f32.xlu1 %v345_v63 }
 0x18a   :  { %v300_v13 = vpop.f32.mrb[4].mxu0 }
 0x18b   :  { %v302_v15 = vpop.f32.mrb[5].mxu0  ;;  %v2079_v16 = vadd.f32 %v300_v13, %v2050_v53 }
 0x18c   :  { %v2084_v18 = vadd.f32 %v302_v15, %v2050_v53  ;;  %v304_v19 = vpop.f32.mrb[6].mxu0 }
 0x18d   :  { %v305_v20 = vpop.f32.mrb[7].mxu0  ;;  %v342_v21 = vmul.f32 %v2074_v8, %v2079_v16 }
 0x18e   :  { %v343_v22 = vmul.f32 %v2076_v14, %v2084_v18 }
 0x18f   :  { %v349_v6 = vadd.f32 %v342_v21, %v341_v17 }
 0x191   :  { %v553_v23 = vpop.f32.mrb[4].mxu1  ;;  %v350_v24 = vadd.f32 %v349_v6, %v343_v22 }
 0x192   :  { %v555_v25 = vpop.f32.mrb[5].mxu1  ;;  %v2091_v28 = vadd.f32 %v553_v23, %v2050_v53 }
 0x193   :  { %v557_v26 = vpop.f32.mrb[6].mxu1  ;;  %351 = vadd.xlane.f32.xlu0 %v350_v24  ;;  %v2094_v29 = vadd.f32 %v555_v25, %v2050_v53 }
 0x194   :  { %v558_v27 = vpop.f32.mrb[7].mxu1  ;;  %v642_v30 = vmul.f32 %v2091_v28, %v2046_v51 }
 0x195   :  { %v643_v31 = vmul.f32 %v2094_v29, %v2048_v52 }
 0x197   :  { %v648_v0 = vadd.f32 %v643_v31, %v642_v30 }
 0x1b5   :  { %v594_v32 = vpop.f32.mrb[8].mxu0 }
 0x1b6   :  { %v2101_v2 = vadd.f32 %v594_v32, %v2050_v53  ;;  %v596_v33 = vpop.f32.mrb[9].mxu0 }
 0x1b7   :  { %v598_v1 = vpop.f32.mrb[10].mxu0  ;;  %v2106_v35 = vadd.f32 %v596_v33, %v2050_v53 }
 0x1b8   :  { %v644_v34 = vmul.f32 %v2101_v2, %v2052_v54  ;;  %v599_v36 = vpop.f32.mrb[11].mxu0 }
 0x1b9   :  { %v645_v39 = vmul.f32 %v2106_v35, %v2069_v11 }
 0x1ba   :  { %v649_v37 = vadd.f32 %v648_v0, %v644_v34  ;;  %v635_v38 = vpop.f32.mrb[8].mxu1 }
 0x1bb   :  { %v2111_v40 = vadd.f32 %v635_v38, %v2050_v53  ;;  %v637_v41 = vpop.f32.mrb[9].mxu1 }
 0x1bc   :  { %650 = vadd.xlane.f32.xlu1 %v649_v37  ;;  %v2114_v42 = vadd.f32 %v637_v41, %v2050_v53  ;;  %v639_v43 = vpop.f32.mrb[10].mxu1 }
 0x1bd   :  { %v646_v44 = vmul.f32 %v2111_v40, %v2074_v8  ;;  %v640_v45 = vpop.f32.mrb[11].mxu1 }
 0x1be   :  { %v647_v46 = vmul.f32 %v2114_v42, %v2076_v14 }
 0x1bf   :  { %v653_v47 = vadd.f32 %v646_v44, %v645_v39 }
 0x1c1   :  { %v654_v48 = vadd.f32 %v653_v47, %v647_v46 }
 0x1c3   :  { %655 = vadd.xlane.f32.xlu0 %v654_v48 }
 0x1e4   :  { %v858_v49 = vpop.f32.mrb[12].mxu0 }
 0x1e5   :  { %v2121_v50 = vadd.f32 %v858_v49, %v2050_v53  ;;  %v860_v57 = vpop.f32.mrb[13].mxu0 }
 0x1e6   :  { %v2124_v58 = vadd.f32 %v860_v57, %v2050_v53  ;;  %v862_v60 = vpop.f32.mrb[14].mxu0 }
 0x1e7   :  { %v947_v3 = vmul.f32 %v2121_v50, %v2046_v51  ;;  %v863_v61 = vpop.f32.mrb[15].mxu0 }
 0x1e8   :  { %v948_v4 = vmul.f32 %v2124_v58, %v2048_v52 }
 0x1e9   :  { %v899_v5 = vpop.f32.mrb[12].mxu1 }
 0x1ea   :  { %v953_v62 = vadd.f32 %v948_v4, %v947_v3  ;;  %v2131_v63 = vadd.f32 %v899_v5, %v2050_v53  ;;  %v901_v9 = vpop.f32.mrb[13].mxu1 }
 0x1eb   :  { %v903_v10 = vpop.f32.mrb[14].mxu1  ;;  %v2136_v17 = vadd.f32 %v901_v9, %v2050_v53  ;;  %v1557_v9 = vmov 0.0  }
 0x1ec   :  { %v949_v7 = vmul.f32 %v2131_v63, %v2052_v54  ;;  %v904_v13 = vpop.f32.mrb[15].mxu1  ;;  %1508 = vmatprep.subr.bf16.mxu0 %v1557_v9  ;;  %1510 = vmatprep.mubr.msk.bf16.mxu0 %vm1558_vm9, %v1557_v9 }
 0x1ed   :  { %v950_v20 = vmul.f32 %v2136_v17, %v2069_v11 }
 0x1ee   :  { %v954_v15 = vadd.f32 %v953_v62, %v949_v7 }
 0x1f0   :  { %955 = vadd.xlane.f32.xlu1 %v954_v15 }
 0x20d   :  { %v940_v19 = vpop.f32.mrb[16].mxu0 }
 0x20e   :  { %v2141_v21 = vadd.f32 %v940_v19, %v2050_v53  ;;  %v942_v22 = vpop.f32.mrb[17].mxu0 }
 0x20f   :  { %v2144_v6 = vadd.f32 %v942_v22, %v2050_v53  ;;  %v944_v23 = vpop.f32.mrb[18].mxu0 }
 0x210   :  { %v951_v24 = vmul.f32 %v2141_v21, %v2074_v8  ;;  %v945_v25 = vpop.f32.mrb[19].mxu0 }
 0x211   :  { %v952_v26 = vmul.f32 %v2144_v6, %v2076_v14  ;;  %v1162_v27 = vpop.f32.mrb[16].mxu1 }
 0x212   :  { %v958_v30 = vadd.f32 %v951_v24, %v950_v20  ;;  %v1164_v31 = vpop.f32.mrb[17].mxu1  ;;  %v2151_v1 = vadd.f32 %v1162_v27, %v2050_v53 }
 0x213   :  { %v1166_v32 = vpop.f32.mrb[18].mxu1  ;;  %v2154_v34 = vadd.f32 %v1164_v31, %v2050_v53 }
 0x214   :  { %v959_v0 = vadd.f32 %v958_v30, %v952_v26  ;;  %v1167_v33 = vpop.f32.mrb[19].mxu1  ;;  %v1251_v36 = vmul.f32 %v2151_v1, %v2046_v51 }
 0x215   :  { %v1252_v37 = vmul.f32 %v2154_v34, %v2048_v52  ;;  %v1559_v33 = vmov 1  }
 0x216   :  { %960 = vadd.xlane.f32.xlu0 %v959_v0  ;;  %v1277_v0 = vld [vmem:[%s2287_s3] sm:$0xf] }
 0x217   :  { %v1257_v44 = vadd.f32 %v1252_v37, %v1251_v36 }
 0x220   :  { %v352_v10 = vpop.xlane.xlu0 %351 }
 0x235   :  { %v1203_v38 = vpop.f32.mrb[20].mxu0 }
 0x236   :  { %v2161_v39 = vadd.f32 %v1203_v38, %v2050_v53  ;;  %v1205_v41 = vpop.f32.mrb[21].mxu0 }
 0x237   :  { %v1207_v43 = vpop.f32.mrb[22].mxu0  ;;  %v2166_v47 = vadd.f32 %v1205_v41, %v2050_v53 }
 0x238   :  { %v1253_v45 = vmul.f32 %v2161_v39, %v2052_v54  ;;  %v1208_v46 = vpop.f32.mrb[23].mxu0 }
 0x239   :  { %v1254_v3 = vmul.f32 %v2166_v47, %v2069_v11  ;;  %v347_v11 = vpop.xlane.xlu1 %346 }
 0x23a   :  { %v1244_v48 = vpop.f32.mrb[20].mxu1  ;;  %v1258_v49 = vadd.f32 %v1257_v44, %v1253_v45 }
 0x23b   :  { %v2169_v51 = vadd.f32 %v1244_v48, %v2050_v53  ;;  %v1246_v52 = vpop.f32.mrb[21].mxu1 }
 0x23c   :  { %v2172_v57 = vadd.f32 %v1246_v52, %v2050_v53  ;;  %v1248_v60 = vpop.f32.mrb[22].mxu1  ;;  %1259 = vadd.xlane.f32.xlu1 %v1258_v49  ;;  %v1279_v53 = vld [vmem:[%s2286_s4] sm:$0xff] }
 0x23d   :  { %v1255_v54 = vmul.f32 %v2169_v51, %v2074_v8  ;;  %v1249_v61 = vpop.f32.mrb[23].mxu1 }
 0x23e   :  { %v1256_v4 = vmul.f32 %v2172_v57, %v2076_v14 }
 0x23f   :  { %v1262_v5 = vadd.f32 %v1255_v54, %v1254_v3 }
 0x241   :  { %v1263_v62 = vadd.f32 %v1262_v5, %v1256_v4 }
 0x243   :  { %1264 = vadd.xlane.f32.xlu0 %v1263_v62 }
 0x249   :  { %v651_v7 = vpop.xlane.xlu1 %650 }
 0x24a   :  { %v652_v15 = vadd.f32 %v651_v7, %v347_v11 }
 0x24d   :  { %1282 = vperm.xlu1 %1527, %v1279_v53  }
 0x250   :  { %v656_v8 = vpop.xlane.xlu0 %655 }
 0x251   :  { %v657_v14 = vadd.f32 %v656_v8, %v352_v10  ;;  %1528 = vset.pattern.permute.xlu1 %v1559_v33 }
 0x27d   :  { %v956_v13 = vpop.xlane.xlu1 %955 }
 0x27e   :  { %v957_v22 = vadd.f32 %v956_v13, %v652_v15 }
 0x2a3   :  { %v961_v19 = vpop.xlane.xlu0 %960 }
 0x2a4   :  { %v962_v23 = vadd.f32 %v961_v19, %v657_v14 }
 0x2c9   :  { %v1260_v20 = vpop.xlane.xlu1 %1259 }
 0x2ca   :  { %v1261_v25 = vadd.f32 %v1260_v20, %v957_v22 }
 0x2cd   :  { %v1283_v36 = vpop.permute.xlu1 %1282 }
 0x2d0   :  { %v1265_v24 = vpop.xlane.xlu0 %1264 }
 0x2d1   :  { %v1266_v26 = vadd.f32 %v1265_v24, %v962_v23 }
 0x2d3   :  { %v1275_v27 = vsel %vm1274_vm10, %v1261_v25, %v1266_v26 }
 0x2d4   :  { %v1276_v30 = vmul.f32 0.0009765625, %v1275_v27 }
 0x2d6   :  { %v1278_v31 = vpack.c.bf16 %v1276_v30, %v1276_v30 }
 0x2d8   :  { %v1291_v32 = vsel %vm1289_vm11, %v1278_v31, 0 }
 0x2d9   :  { %1509 = vmatpush3.bf16.msra.mxu0 %v1291_v32 }
 0x2dc   :  { %1511 = vmatmul.mubr.msk.bf16.vlgmr.msra.gmra.mrb[24].mxu0 %vm1285_vm12, %v1277_v0 }
 0x3af   :  { %v1327_v37 = vpop.f32.mrb[24].mxu0 }
 0x3b0   :  { %v1328_v38 = vadd.f32 %v1327_v37, %v1283_v36  ;;  %v1512_v41 = vpop.f32.mrb[25].mxu0 }
 0x3b1   :  { %v1330_v43 = vpop.f32.mrb[26].mxu0 }
 0x3b2   :  { %v1493_v44 = vmul.f32 -1.442695, %v1328_v38  ;;  %v1513_v45 = vpop.f32.mrb[27].mxu0 }
 0x3b4   :  { %1544 = vpow2.f32 %v1493_v44 }
 0x3be   :  { %v1545_v46 = vpop.eup %1544 }
 0x3bf   :  { %v1336_v48 = vadd.f32 1.0, %v1545_v46 }
 0x3c1   :  { %1546 = vrcp.f32 %v1336_v48 }
 0x3cb   :  { %v1547_v49 = vpop.eup %1546 }
 0x3cc   :  { %1393 = vperm.xlu1 %1528, %v1547_v49   ;;  %1353 = vperm.xlu0 %1526, %v1547_v49  }
 0x3d0   :  { %1529 = vset.pattern.permute.xlu0 %v1559_v33 }
 0x44b   :  { %v1394_v52 = vpop.permute.xlu1 %1393  ;;  %v1354_v4 = vpop.permute.xlu0 %1353 }
 0x44c   :  { %v1396_v60 = vmul.f32 %v1394_v52, %v2072_v12  ;;  %v1397_v3 = vmul.f32 %v1394_v52, %v2079_v16  ;;  %v1398_v54 = vmul.f32 %v1394_v52, %v2084_v18  ;;  %v1399_v61 = vmul.f32 %v1394_v52, %v2106_v35 }
 0x44d   :  { %v1400_v5 = vmul.f32 %v1394_v52, %v2111_v40  ;;  %v1401_v62 = vmul.f32 %v1394_v52, %v2114_v42  ;;  %v1402_v9 = vmul.f32 %v1394_v52, %v2136_v17  ;;  %v1403_v53 = vmul.f32 %v1394_v52, %v2141_v21 }
 0x44e   :  { %v1404_v11 = vmul.f32 %v1394_v52, %v2144_v6  ;;  %v1405_v10 = vmul.f32 %v1394_v52, %v2166_v47  ;;  %v1406_v12 = vmul.f32 %v1394_v52, %v2169_v51  ;;  %v1407_v16 = vmul.f32 %v1394_v52, %v2172_v57  ;;  %1494 = vst [vmem:[%s2288_s6 + $0x60] sm:$0xff] %v1396_v60 }
 0x44f   :  { %1495 = vst [vmem:[%s2288_s6 + $0x68] sm:$0xff] %v1397_v3  ;;  %1496 = vst [vmem:[%s2288_s6 + $0x70] sm:$0xff] %v1398_v54  ;;  %v1356_v18 = vmul.f32 %v1354_v4, %v2055_v55  ;;  %v1357_v35 = vmul.f32 %v1354_v4, %v2058_v56  ;;  %v1358_v40 = vmul.f32 %v1354_v4, %v2061_v59 }
 0x450   :  { %1497 = vst [vmem:[%s2288_s6 + $0x78] sm:$0xff] %v1399_v61  ;;  %1498 = vst [vmem:[%s2288_s6 + $0x80] sm:$0xff] %v1400_v5  ;;  %v1359_v42 = vmul.f32 %v1354_v4, %v2091_v28  ;;  %v1360_v55 = vmul.f32 %v1354_v4, %v2094_v29  ;;  %v1361_v56 = vmul.f32 %v1354_v4, %v2101_v2 }
 0x451   :  { %1499 = vst [vmem:[%s2288_s6 + $0x88] sm:$0xff] %v1401_v62  ;;  %1500 = vst [vmem:[%s2288_s6 + $0x90] sm:$0xff] %v1402_v9  ;;  %v1362_v59 = vmul.f32 %v1354_v4, %v2121_v50  ;;  %v1363_v28 = vmul.f32 %v1354_v4, %v2124_v58  ;;  %v1364_v17 = vmul.f32 %v1354_v4, %v2131_v63 }
 0x452   :  { %1501 = vst [vmem:[%s2288_s6 + $0x98] sm:$0xff] %v1403_v53  ;;  %1502 = vst [vmem:[%s2288_s6 + $0xa0] sm:$0xff] %v1404_v11  ;;  %v1365_v21 = vmul.f32 %v1354_v4, %v2151_v1  ;;  %v1366_v6 = vmul.f32 %v1354_v4, %v2154_v34  ;;  %v1367_v47 = vmul.f32 %v1354_v4, %v2161_v39 }
 0x453   :  { %1503 = vst [vmem:[%s2288_s6 + $0xa8] sm:$0xff] %v1405_v10  ;;  %1504 = vst [vmem:[%s2288_s6 + $0xb0] sm:$0xff] %v1406_v12 }
 0x454   :  { %1505 = vst [vmem:[%s2288_s6 + $0xb8] sm:$0xff] %v1407_v16  ;;  %1368 = vst [vmem:[%s2288_s6] sm:$0xff] %v1356_v18 }
 0x455   :  { %1369 = vst [vmem:[%s2288_s6 + $0x8] sm:$0xff] %v1357_v35  ;;  %1370 = vst [vmem:[%s2288_s6 + $0x10] sm:$0xff] %v1358_v40 }
 0x456   :  { %1371 = vst [vmem:[%s2288_s6 + $0x18] sm:$0xff] %v1359_v42  ;;  %1372 = vst [vmem:[%s2288_s6 + $0x20] sm:$0xff] %v1360_v55 }
 0x457   :  { %1373 = vst [vmem:[%s2288_s6 + $0x28] sm:$0xff] %v1361_v56  ;;  %1374 = vst [vmem:[%s2288_s6 + $0x30] sm:$0xff] %v1362_v59 }
 0x458   :  { %1375 = vst [vmem:[%s2288_s6 + $0x38] sm:$0xff] %v1363_v28  ;;  %1376 = vst [vmem:[%s2288_s6 + $0x40] sm:$0xff] %v1364_v17 }
 0x459   :  { %1377 = vst [vmem:[%s2288_s6 + $0x48] sm:$0xff] %v1365_v21  ;;  %1378 = vst [vmem:[%s2288_s6 + $0x50] sm:$0xff] %v1366_v6 }
 0x45a   :  { %1379 = vst [vmem:[%s2288_s6 + $0x58] sm:$0xff] %v1367_v47 }

</bundles_post_ra>
